<compile_context>
chip_gen: v5e
topology: v5e:2x2
jax: 0.10.0
libtpu: 0.0.40
codegen_flags: <defaults>
</compile_context>

<pallas_src>
import jax
import jax.numpy as jnp
from jax.experimental import pallas as pl
from jax.experimental.pallas import tpu as pltpu

NUM_CLASSES = 11
IN_FEATURES = 1024
H1 = 512
H2 = 128
HEAD_PAD = 128          # lane-dense head width (multiple of 128)
MAX_TILE_B = 512        # rows of the batch per grid step


def _round_up(n, m):
    return ((n + m - 1) // m) * m


def mlp_kernel(x_ref, w1_ref, b1_ref, w2_ref, b2_ref, w3_ref, b3_ref, o_ref):
    # Layer 1: (tB,1024)bf16 @ (1024,512)bf16 -> f32, + bias, ReLU.
    h1 = jnp.dot(x_ref[...], w1_ref[...], preferred_element_type=jnp.float32)
    h1 = jnp.maximum(h1 + b1_ref[...], 0.0)
    # Layer 2: (tB,512)bf16 @ (512,128)bf16 -> f32, + bias, ReLU.
    h2 = jnp.dot(h1.astype(jnp.bfloat16), w2_ref[...],
                 preferred_element_type=jnp.float32)
    h2 = jnp.maximum(h2 + b2_ref[...], 0.0)
    # Head: (tB,128)bf16 @ (128,128)bf16 -> f32, + bias (padded to 128 lanes).
    out = jnp.dot(h2.astype(jnp.bfloat16), w3_ref[...],
                  preferred_element_type=jnp.float32)
    o_ref[...] = (out + b3_ref[...]).astype(o_ref.dtype)


def simple_mlp_forward(x_nchw, params):
    """x_nchw: (B, C, H, W) with C*H*W == 1024. Returns (B, NUM_CLASSES) f32."""
    w1, b1, w2, b2, w3, b3 = params
    B = x_nchw.shape[0]
    # Flatten exactly like nn.Flatten (start_dim=1), row-major.
    x = x_nchw.reshape(B, -1).astype(jnp.float32)
    assert x.shape[1] == IN_FEATURES, f"expected {IN_FEATURES} feats, got {x.shape[1]}"

    # Batch tile: >=8 (sublane multiple), capped at MAX_TILE_B; pad B to a
    # multiple of the tile so every grid step sees a full block.
    tile_b = min(MAX_TILE_B, _round_up(B, 8))
    b_pad = _round_up(B, tile_b)
    if b_pad != B:
        x = jnp.pad(x, ((0, b_pad - B), (0, 0)))
    n_tiles = b_pad // tile_b

    # bf16 MXU inputs; accumulation stays f32 inside the kernel.
    x_bf = x.astype(jnp.bfloat16)
    w1_bf = w1.astype(jnp.bfloat16)
    w2_bf = w2.astype(jnp.bfloat16)
    # Pad the head to a lane-dense (128, 128) weight / (1, 128) bias.
    w3_p = jnp.zeros((H2, HEAD_PAD), jnp.float32).at[:, :NUM_CLASSES].set(w3)
    w3_bf = w3_p.astype(jnp.bfloat16)
    b3_p = jnp.zeros((1, HEAD_PAD), jnp.float32).at[:, :NUM_CLASSES].set(b3)
    b1_f = b1.astype(jnp.float32)
    b2_f = b2.astype(jnp.float32)

    # Weights/biases: full blocks, same block for every grid step (resident).
    resident = lambda shape: pl.BlockSpec(shape, lambda i: (0, 0))

    flops = 2 * b_pad * (IN_FEATURES * H1 + H1 * H2 + H2 * HEAD_PAD)
    bytes_accessed = (
        x_bf.size * 2
        + (w1_bf.size + w2_bf.size + w3_bf.size) * 2
        + (b1_f.size + b2_f.size + b3_p.size) * 4
        + b_pad * HEAD_PAD * 4
    )

    out_padded = pl.pallas_call(
        mlp_kernel,
        out_shape=jax.ShapeDtypeStruct((b_pad, HEAD_PAD), jnp.float32),
        grid=(n_tiles,),
        in_specs=[
            pl.BlockSpec((tile_b, IN_FEATURES), lambda i: (i, 0)),
            resident(w1_bf.shape), resident(b1_f.shape),
            resident(w2_bf.shape), resident(b2_f.shape),
            resident(w3_bf.shape), resident(b3_p.shape),
        ],
        out_specs=pl.BlockSpec((tile_b, HEAD_PAD), lambda i: (i, 0)),
        compiler_params=pltpu.CompilerParams(
            dimension_semantics=("parallel",)),
        cost_estimate=pl.CostEstimate(
            flops=flops, transcendentals=0, bytes_accessed=bytes_accessed),
    )(x_bf, w1_bf, b1_f, w2_bf, b2_f, w3_bf, b3_p)

    # Drop batch padding and the zero-padded head columns outside the kernel.
    return out_padded[:B, :NUM_CLASSES]


def init_params(key):
    """Deterministic init mimicking PyTorch Linear default (U(+/- 1/sqrt(fan_in)))."""
    def linear(k, fan_in, fan_out):
        kw, kb = jax.random.split(k)
        bound = 1.0 / (fan_in ** 0.5)
        # Stored as (in, out) so the kernel computes x @ W (== PyTorch x @ W.T).
        w = jax.random.uniform(kw, (fan_in, fan_out), jnp.float32, -bound, bound)
        b = jax.random.uniform(kb, (1, fan_out), jnp.float32, -bound, bound)
        return w, b

    k1, k2, k3 = jax.random.split(key, 3)
    w1, b1 = linear(k1, IN_FEATURES, H1)
    w2, b2 = linear(k2, H1, H2)
    w3, b3 = linear(k3, H2, NUM_CLASSES)
    return (w1, b1, w2, b2, w3, b3)


def reference_forward(x_nchw, params):
    """Pure-JAX f32 reference for correctness check."""
    w1, b1, w2, b2, w3, b3 = params
    x = x_nchw.reshape(x_nchw.shape[0], -1).astype(jnp.float32)
    h1 = jnp.maximum(x @ w1 + b1, 0.0)
    h2 = jnp.maximum(h1 @ w2 + b2, 0.0)
    return h2 @ w3 + b3


if __name__ == "__main__":
    key = jax.random.PRNGKey(0)
    k_x, k_p = jax.random.split(key)

    # Batch=2, NCHW input whose flattened size is 1024 (4*16*16).
    x = jax.random.normal(k_x, (2, 4, 16, 16), dtype=jnp.float32)
    params = init_params(k_p)

    out = simple_mlp_forward(x, params)
    out = jax.block_until_ready(out)

    ref = reference_forward(x, params)
    assert out.shape == (2, NUM_CLASSES), out.shape
    # bf16 MXU inputs (f32 accumulation) -> loosen tolerance vs f32 reference.
    assert jnp.allclose(out, ref, atol=5e-2, rtol=5e-2), "mismatch vs reference"

    print("KERNEL_OK")
</pallas_src>

<mosaic_0001>
module attributes {stable_mosaic.version = 11 : i64} {
  func.func @mlp_kernel(%arg0: i32, %arg1: memref<8x1024xbf16, #tpu.memory_space<vmem>>, %arg2: memref<1024x512xbf16, #tpu.memory_space<vmem>>, %arg3: memref<1x512xf32, #tpu.memory_space<vmem>>, %arg4: memref<512x128xbf16, #tpu.memory_space<vmem>>, %arg5: memref<1x128xf32, #tpu.memory_space<vmem>>, %arg6: memref<128x128xbf16, #tpu.memory_space<vmem>>, %arg7: memref<1x128xf32, #tpu.memory_space<vmem>>, %arg8: memref<8x128xf32, #tpu.memory_space<vmem>>) attributes {dimension_semantics = [#tpu.dimension_semantics<parallel>], iteration_bounds = array<i64: 1>, scalar_prefetch = 0 : i64, scratch_operands = 0 : i64, tpu.core_type = #tpu.core_type<tc>, window_params = [{transform_indices = @transform_0, window_bounds = array<i64: 8, 1024>}, {pipeline_mode = #tpu.pipeline_mode<synchronous>, transform_indices = @transform_1, window_bounds = array<i64: 1024, 512>}, {pipeline_mode = #tpu.pipeline_mode<synchronous>, transform_indices = @transform_2, window_bounds = array<i64: 1, 512>}, {pipeline_mode = #tpu.pipeline_mode<synchronous>, transform_indices = @transform_3, window_bounds = array<i64: 512, 128>}, {pipeline_mode = #tpu.pipeline_mode<synchronous>, transform_indices = @transform_4, window_bounds = array<i64: 1, 128>}, {pipeline_mode = #tpu.pipeline_mode<synchronous>, transform_indices = @transform_5, window_bounds = array<i64: 128, 128>}, {pipeline_mode = #tpu.pipeline_mode<synchronous>, transform_indices = @transform_6, window_bounds = array<i64: 1, 128>}, {transform_indices = @transform_7, window_bounds = array<i64: 8, 128>}]} {
    %c0 = arith.constant 0 : index
    %c0_0 = arith.constant 0 : index
    %0 = vector.load %arg1[%c0, %c0_0] : memref<8x1024xbf16, #tpu.memory_space<vmem>>, vector<8x1024xbf16>
    %c0_1 = arith.constant 0 : index
    %c0_2 = arith.constant 0 : index
    %1 = vector.load %arg2[%c0_1, %c0_2] : memref<1024x512xbf16, #tpu.memory_space<vmem>>, vector<1024x512xbf16>
    %cst = arith.constant dense<0.000000e+00> : vector<8x512xf32>
    %2 = tpu.matmul %0, %1, %cst {dimension_numbers = #tpu.dot_dimension_numbers<[1], [0], [0], [1], [0, 0, 1, 1], [], []>} : vector<8x1024xbf16>, vector<1024x512xbf16>, vector<8x512xf32> -> vector<8x512xf32>
    %c0_3 = arith.constant 0 : index
    %c0_4 = arith.constant 0 : index
    %3 = vector.load %arg3[%c0_3, %c0_4] : memref<1x512xf32, #tpu.memory_space<vmem>>, vector<1x512xf32>
    %4 = vector.broadcast %3 : vector<1x512xf32> to vector<8x512xf32>
    %5 = arith.addf %2, %4 : vector<8x512xf32>
    %cst_5 = arith.constant 0.000000e+00 : f32
    %6 = vector.broadcast %cst_5 : f32 to vector<8x512xf32>
    %7 = arith.maximumf %5, %6 : vector<8x512xf32>
    %8 = arith.truncf %7 : vector<8x512xf32> to vector<8x512xbf16>
    %c0_6 = arith.constant 0 : index
    %c0_7 = arith.constant 0 : index
    %9 = vector.load %arg4[%c0_6, %c0_7] : memref<512x128xbf16, #tpu.memory_space<vmem>>, vector<512x128xbf16>
    %cst_8 = arith.constant dense<0.000000e+00> : vector<8x128xf32>
    %10 = tpu.matmul %8, %9, %cst_8 {dimension_numbers = #tpu.dot_dimension_numbers<[1], [0], [0], [1], [0, 0, 1, 1], [], []>} : vector<8x512xbf16>, vector<512x128xbf16>, vector<8x128xf32> -> vector<8x128xf32>
    %c0_9 = arith.constant 0 : index
    %c0_10 = arith.constant 0 : index
    %11 = vector.load %arg5[%c0_9, %c0_10] : memref<1x128xf32, #tpu.memory_space<vmem>>, vector<1x128xf32>
    %12 = vector.broadcast %11 : vector<1x128xf32> to vector<8x128xf32>
    %13 = arith.addf %10, %12 : vector<8x128xf32>
    %cst_11 = arith.constant 0.000000e+00 : f32
    %14 = vector.broadcast %cst_11 : f32 to vector<8x128xf32>
    %15 = arith.maximumf %13, %14 : vector<8x128xf32>
    %16 = arith.truncf %15 : vector<8x128xf32> to vector<8x128xbf16>
    %c0_12 = arith.constant 0 : index
    %c0_13 = arith.constant 0 : index
    %17 = vector.load %arg6[%c0_12, %c0_13] : memref<128x128xbf16, #tpu.memory_space<vmem>>, vector<128x128xbf16>
    %cst_14 = arith.constant dense<0.000000e+00> : vector<8x128xf32>
    %18 = tpu.matmul %16, %17, %cst_14 {dimension_numbers = #tpu.dot_dimension_numbers<[1], [0], [0], [1], [0, 0, 1, 1], [], []>} : vector<8x128xbf16>, vector<128x128xbf16>, vector<8x128xf32> -> vector<8x128xf32>
    %c0_15 = arith.constant 0 : index
    %c0_16 = arith.constant 0 : index
    %19 = vector.load %arg7[%c0_15, %c0_16] : memref<1x128xf32, #tpu.memory_space<vmem>>, vector<1x128xf32>
    %20 = vector.broadcast %19 : vector<1x128xf32> to vector<8x128xf32>
    %21 = arith.addf %18, %20 : vector<8x128xf32>
    %c0_17 = arith.constant 0 : index
    %c0_18 = arith.constant 0 : index
    %22 = vector.load %arg8[%c0_17, %c0_18] : memref<8x128xf32, #tpu.memory_space<vmem>>, vector<8x128xf32>
    tpu.vector_store %arg8[%c0_17, %c0_18], %21 {strides = array<i32>} : memref<8x128xf32, #tpu.memory_space<vmem>>, vector<8x128xf32>,
    return
  }
  func.func @transform_0(%arg0: i32) -> (i32, i32) {
    %c0_i32 = arith.constant 0 : i32
    %c0_i32_0 = arith.constant 0 : i32
    return %arg0, %c0_i32 : i32, i32
  }
  func.func @transform_1(%arg0: i32) -> (i32, i32) {
    %c0_i32 = arith.constant 0 : i32
    %c0_i32_0 = arith.constant 0 : i32
    %c0_i32_1 = arith.constant 0 : i32
    return %c0_i32, %c0_i32_0 : i32, i32
  }
  func.func @transform_2(%arg0: i32) -> (i32, i32) {
    %c0_i32 = arith.constant 0 : i32
    %c0_i32_0 = arith.constant 0 : i32
    %c0_i32_1 = arith.constant 0 : i32
    return %c0_i32, %c0_i32_0 : i32, i32
  }
  func.func @transform_3(%arg0: i32) -> (i32, i32) {
    %c0_i32 = arith.constant 0 : i32
    %c0_i32_0 = arith.constant 0 : i32
    %c0_i32_1 = arith.constant 0 : i32
    return %c0_i32, %c0_i32_0 : i32, i32
  }
  func.func @transform_4(%arg0: i32) -> (i32, i32) {
    %c0_i32 = arith.constant 0 : i32
    %c0_i32_0 = arith.constant 0 : i32
    %c0_i32_1 = arith.constant 0 : i32
    return %c0_i32, %c0_i32_0 : i32, i32
  }
  func.func @transform_5(%arg0: i32) -> (i32, i32) {
    %c0_i32 = arith.constant 0 : i32
    %c0_i32_0 = arith.constant 0 : i32
    %c0_i32_1 = arith.constant 0 : i32
    return %c0_i32, %c0_i32_0 : i32, i32
  }
  func.func @transform_6(%arg0: i32) -> (i32, i32) {
    %c0_i32 = arith.constant 0 : i32
    %c0_i32_0 = arith.constant 0 : i32
    %c0_i32_1 = arith.constant 0 : i32
    return %c0_i32, %c0_i32_0 : i32, i32
  }
  func.func @transform_7(%arg0: i32) -> (i32, i32) {
    %c0_i32 = arith.constant 0 : i32
    %c0_i32_0 = arith.constant 0 : i32
    return %arg0, %c0_i32 : i32, i32
  }
}

</mosaic_0001>

<bundles_post_ra>
// kernel: tpu_custom_call.1
= control target key start
LH: loop header
LB: loop body
LE: loop exit
PB: predicated region body
PF: predicated region fallthrough
CT: control target
= control target key end

     0   :  { %12 = vsyncpa [#allocation3], 0  ;;  %s4308_s0 = inlined_call_operand.hbm [shape: bf16[8,1024], index: 0, kind: input, shape index: {}]   ;;  %s4309_s1 = inlined_call_operand.hbm [shape: bf16[1024,512], index: 1, kind: input, shape index: {}]   ;;  %s4310_s2 = inlined_call_operand.hbm [shape: f32[1,512], index: 2, kind: input, shape index: {}]   ;;  %s4311_s3 = inlined_call_operand.hbm [shape: bf16[512,128], index: 3, kind: input, shape index: {}]   ;;  %s4312_s4 = inlined_call_operand.vmem [shape: f32[1,128], index: 4, kind: input, shape index: {}]   ;;  %s4313_s5 = inlined_call_operand.hbm [shape: bf16[128,128], index: 5, kind: input, shape index: {}]   ;;  %s4314_s6 = inlined_call_operand.vmem [shape: f32[1,128], index: 6, kind: input, shape index: {}]   ;;  %s4315_s7 = inlined_call_operand.hbm [shape: f32[8,128], index: 7, kind: output, shape index: {}]  }
   0x1   :  { %13 = vsyncpa [#allocation6], 0 }
   0x2   :  { %14 = vsyncpa [#allocation9], 0  ;;  %s31_s26 = sshll.u32 %s4309_s1, 4  ;;  %s32_s26 = int_to_ptr.hbm [resolvable:$true] %s31_s26 }
   0x3   :  { %15 = vsyncpa [#allocation4], 0  ;;  %s4162_s27 = smov [#allocation5]   ;;  %s55_s8 = sshll.u32 %s4311_s3, 4  ;;  %s56_s8 = int_to_ptr.hbm [resolvable:$true] %s55_s8 }
   0x4   :  { %s33_s28 = sshll.u32 %s4162_s27, 4  ;;  %s4163_s9 = smov 256   ;;  %s34_s28 = int_to_ptr.vmem [resolvable:$true] %s33_s28 }
   0x5   :  { %s4164_s10 = smov 16   ;;  %s4165_s11 = smov [#allocation8]  }
   0x6   :  { %39 = dma.hbm_to_vmem [thread:$0]  %s32_s26, 32768, %s34_s28, [#allocation6], %s4163_s9, %s4163_s9, %s4164_s10  }
   0x7   :  { %s57_s12 = sshll.u32 %s4165_s11, 4  ;;  %s4166_s13 = smov 64   ;;  %s58_s12 = int_to_ptr.vmem [resolvable:$true] %s57_s12 }
   0x8   :  { %s4167_s14 = smov 4   ;;  %s21_s16 = sshll.u32 %s4308_s0, 4  ;;  %s22_s16 = int_to_ptr.hbm [resolvable:$true] %s21_s16 }
   0x9   :  { %63 = dma.hbm_to_vmem [thread:$0]  %s56_s8, 4096, %s58_s12, [#allocation9], %s4166_s13, %s4166_s13, %s4167_s14  }
   0xa   :  { %s4168_s17 = smov [#allocation2]   ;;  %s45_s20 = sshll.u32 %s4310_s2, 4  ;;  %s46_s20 = int_to_ptr.hbm [resolvable:$true] %s45_s20 }
   0xb   :  { %s23_s18 = sshll.u32 %s4168_s17, 4  ;;  %s4169_s21 = smov [#allocation7]   ;;  %s24_s18 = int_to_ptr.vmem [resolvable:$true] %s23_s18 }
   0xc   :  { %26 = dma.hbm_to_vmem [thread:$0]  %s22_s16, 512, %s24_s18, [#allocation3]  }
   0xd   :  { %s47_s22 = sshll.u32 %s4169_s21, 4  ;;  %s70_s25 = sshll.u32 %s4313_s5, 4  ;;  %s48_s22 = int_to_ptr.vmem [resolvable:$true] %s47_s22  ;;  %s71_s25 = int_to_ptr.hbm [resolvable:$true] %s70_s25 }
   0xe   :  { %50 = dma.hbm_to_vmem [thread:$0]  %s46_s20, 64, %s48_s22, [#allocation6]  }
   0xf   :  { %s4170_s0 = smov [#allocation10]  }
  0x10   :  { %s72_s26 = sshll.u32 %s4170_s0, 4  ;;  %s73_s26 = int_to_ptr.vmem [resolvable:$true] %s72_s26 }
  0x11   :  { %78 = dma.hbm_to_vmem [thread:$0]  %s71_s25, 1024, %s73_s26, [#allocation9], %s4166_s13, %s4166_s13, %s4167_s14  }
  0x12   :  { %4154 = dma.done.wait [#allocation3], 512  }
  0x13   :  { %4155 = vsyncadd [#allocation3], 4294966784 }
  0x14   :  { %4156 = dma.done.wait [#allocation6], 32832  }
  0x15   :  { %4157 = vsyncadd [#allocation6], 4294934464 }
  0x16   :  { %4158 = dma.done.wait [#allocation9], 5120  }
  0x17   :  { %4159 = vsyncadd [#allocation9], 4294962176  ;;  %v2632_v0 = vld [vmem:[#allocation5 + $0xe0] sm:$0xf]  ;;  %v3732_v1 = vld [vmem:[#allocation5 + $0xec] sm:$0xf0] }
  0x18   :  { %v2760_v2 = vld [vmem:[#allocation5 + $0x1e0] sm:$0xf]  ;;  %v2633_v3 = vor.u32 %v3732_v1, %v2632_v0  ;;  %v3764_v4 = vld [vmem:[#allocation5 + $0x1ec] sm:$0xf0]  ;;  %s4171_s28 = smov [#allocation11]   ;;  %s2506_s9 = sshll.u32 %s4315_s7, 4  ;;  %s2507_s9 = int_to_ptr.hbm [resolvable:$true] %s2506_s9 }
  0x19   :  { %v2888_v5 = vld [vmem:[#allocation5 + $0x2e0] sm:$0xf]  ;;  %v3796_v6 = vld [vmem:[#allocation5 + $0x2ec] sm:$0xf0]  ;;  %v2761_v7 = vor.u32 %v3764_v4, %v2760_v2  ;;  %s2504_s29 = sshll.u32 %s4171_s28, 4  ;;  %s2505_s29 = int_to_ptr.vmem [resolvable:$true] %s2504_s29 }
  0x1a   :  { %v2889_v8 = vor.u32 %v3796_v6, %v2888_v5  ;;  %v3016_v9 = vld [vmem:[#allocation5 + $0x3e0] sm:$0xf]  ;;  %v3828_v10 = vld [vmem:[#allocation5 + $0x3ec] sm:$0xf0]  ;;  %1679 = vmatpush.bf16.msra.mxu0 %v2633_v3 }
  0x1b   :  { %v2616_v11 = vld [vmem:[#allocation5 + $0xc0] sm:$0xf]  ;;  %v3017_v12 = vor.u32 %v3828_v10, %v3016_v9  ;;  %v3728_v13 = vld [vmem:[#allocation5 + $0xcc] sm:$0xf0]  ;;  %1692 = vmatpush.bf16.msra.mxu1 %v2761_v7 }
  0x1c   :  { %v2744_v14 = vld [vmem:[#allocation5 + $0x1c0] sm:$0xf]  ;;  %v3760_v15 = vld [vmem:[#allocation5 + $0x1cc] sm:$0xf0]  ;;  %1705 = vmatpush.bf16.msra.mxu2 %v2889_v8  ;;  %v2617_v16 = vor.u32 %v3728_v13, %v2616_v11 }
  0x1d   :  { %v2745_v17 = vor.u32 %v3760_v15, %v2744_v14  ;;  %v2872_v18 = vld [vmem:[#allocation5 + $0x2c0] sm:$0xf]  ;;  %v3792_v19 = vld [vmem:[#allocation5 + $0x2cc] sm:$0xf0]  ;;  %1718 = vmatpush.bf16.msra.mxu3 %v3017_v12 }
  0x1e   :  { %v3000_v20 = vld [vmem:[#allocation5 + $0x3c0] sm:$0xf]  ;;  %v2873_v21 = vor.u32 %v3792_v19, %v2872_v18  ;;  %v3824_v22 = vld [vmem:[#allocation5 + $0x3cc] sm:$0xf0]  ;;  %1680 = vmatpush.bf16.msra.mxu0 %v2617_v16 }
  0x1f   :  { %v2600_v23 = vld [vmem:[#allocation5 + $0xa0] sm:$0xf]  ;;  %v3724_v24 = vld [vmem:[#allocation5 + $0xac] sm:$0xf0]  ;;  %v3001_v25 = vor.u32 %v3824_v22, %v3000_v20  ;;  %1693 = vmatpush.bf16.msra.mxu1 %v2745_v17 }
  0x20   :  { %v2728_v26 = vld [vmem:[#allocation5 + $0x1a0] sm:$0xf]  ;;  %v3756_v27 = vld [vmem:[#allocation5 + $0x1ac] sm:$0xf0]  ;;  %v2601_v29 = vor.u32 %v3724_v24, %v2600_v23  ;;  %1706 = vmatpush.bf16.msra.mxu2 %v2873_v21 }
  0x21   :  { %v2856_v28 = vld [vmem:[#allocation5 + $0x2a0] sm:$0xf]  ;;  %v3788_v30 = vld [vmem:[#allocation5 + $0x2ac] sm:$0xf0]  ;;  %v2729_v33 = vor.u32 %v3756_v27, %v2728_v26  ;;  %1719 = vmatpush.bf16.msra.mxu3 %v3001_v25 }
  0x22   :  { %v2984_v31 = vld [vmem:[#allocation5 + $0x3a0] sm:$0xf]  ;;  %v3820_v32 = vld [vmem:[#allocation5 + $0x3ac] sm:$0xf0]  ;;  %v2857_v34 = vor.u32 %v3788_v30, %v2856_v28  ;;  %1681 = vmatpush.bf16.msra.mxu0 %v2601_v29 }
  0x23   :  { %v2584_v35 = vld [vmem:[#allocation5 + $0x80] sm:$0xf]  ;;  %v3720_v36 = vld [vmem:[#allocation5 + $0x8c] sm:$0xf0]  ;;  %v2985_v38 = vor.u32 %v3820_v32, %v2984_v31  ;;  %1694 = vmatpush.bf16.msra.mxu1 %v2729_v33 }
  0x24   :  { %v2712_v37 = vld [vmem:[#allocation5 + $0x180] sm:$0xf]  ;;  %v3752_v39 = vld [vmem:[#allocation5 + $0x18c] sm:$0xf0]  ;;  %v2585_v44 = vor.u32 %v3720_v36, %v2584_v35  ;;  %1707 = vmatpush.bf16.msra.mxu2 %v2857_v34 }
  0x25   :  { %v2840_v40 = vld [vmem:[#allocation5 + $0x280] sm:$0xf]  ;;  %v3784_v41 = vld [vmem:[#allocation5 + $0x28c] sm:$0xf0]  ;;  %v2713_v45 = vor.u32 %v3752_v39, %v2712_v37  ;;  %1720 = vmatpush.bf16.msra.mxu3 %v2985_v38 }
  0x26   :  { %v2968_v42 = vld [vmem:[#allocation5 + $0x380] sm:$0xf]  ;;  %v3816_v43 = vld [vmem:[#allocation5 + $0x38c] sm:$0xf0]  ;;  %v2841_v46 = vor.u32 %v3784_v41, %v2840_v40  ;;  %1682 = vmatpush.bf16.msra.mxu0 %v2585_v44 }
  0x27   :  { %v2568_v47 = vld [vmem:[#allocation5 + $0x60] sm:$0xf]  ;;  %v3716_v48 = vld [vmem:[#allocation5 + $0x6c] sm:$0xf0]  ;;  %v2969_v50 = vor.u32 %v3816_v43, %v2968_v42  ;;  %1695 = vmatpush.bf16.msra.mxu1 %v2713_v45 }
  0x28   :  { %v2696_v49 = vld [vmem:[#allocation5 + $0x160] sm:$0xf]  ;;  %v3748_v51 = vld [vmem:[#allocation5 + $0x16c] sm:$0xf0]  ;;  %v2569_v56 = vor.u32 %v3716_v48, %v2568_v47  ;;  %1708 = vmatpush.bf16.msra.mxu2 %v2841_v46 }
  0x29   :  { %v2824_v52 = vld [vmem:[#allocation5 + $0x260] sm:$0xf]  ;;  %v3780_v53 = vld [vmem:[#allocation5 + $0x26c] sm:$0xf0]  ;;  %v2697_v57 = vor.u32 %v3748_v51, %v2696_v49  ;;  %1721 = vmatpush.bf16.msra.mxu3 %v2969_v50 }
  0x2a   :  { %v2952_v54 = vld [vmem:[#allocation5 + $0x360] sm:$0xf]  ;;  %v3812_v55 = vld [vmem:[#allocation5 + $0x36c] sm:$0xf0]  ;;  %v2825_v58 = vor.u32 %v3780_v53, %v2824_v52  ;;  %1683 = vmatpush.bf16.msra.mxu0 %v2569_v56 }
  0x2b   :  { %v2552_v59 = vld [vmem:[#allocation5 + $0x40] sm:$0xf]  ;;  %v3712_v60 = vld [vmem:[#allocation5 + $0x4c] sm:$0xf0]  ;;  %v2953_v62 = vor.u32 %v3812_v55, %v2952_v54  ;;  %1696 = vmatpush.bf16.msra.mxu1 %v2697_v57 }
  0x2c   :  { %v2680_v61 = vld [vmem:[#allocation5 + $0x140] sm:$0xf]  ;;  %v3744_v63 = vld [vmem:[#allocation5 + $0x14c] sm:$0xf0]  ;;  %v2553_v4 = vor.u32 %v3712_v60, %v2552_v59  ;;  %1709 = vmatpush.bf16.msra.mxu2 %v2825_v58 }
  0x2d   :  { %v2808_v0 = vld [vmem:[#allocation5 + $0x240] sm:$0xf]  ;;  %v3776_v1 = vld [vmem:[#allocation5 + $0x24c] sm:$0xf0]  ;;  %v2681_v5 = vor.u32 %v3744_v63, %v2680_v61  ;;  %1722 = vmatpush.bf16.msra.mxu3 %v2953_v62 }
  0x2e   :  { %v2936_v2 = vld [vmem:[#allocation5 + $0x340] sm:$0xf]  ;;  %v3808_v3 = vld [vmem:[#allocation5 + $0x34c] sm:$0xf0]  ;;  %v2809_v6 = vor.u32 %v3776_v1, %v2808_v0  ;;  %1684 = vmatpush.bf16.msra.mxu0 %v2553_v4 }
  0x2f   :  { %v2536_v7 = vld [vmem:[#allocation5 + $0x20] sm:$0xf]  ;;  %v3708_v8 = vld [vmem:[#allocation5 + $0x2c] sm:$0xf0]  ;;  %v2937_v10 = vor.u32 %v3808_v3, %v2936_v2  ;;  %1697 = vmatpush.bf16.msra.mxu1 %v2681_v5  ;;  %v102_v2 = vld [vmem:[#allocation2 + $0x8] sm:$0xff] }
  0x30   :  { %v2664_v9 = vld [vmem:[#allocation5 + $0x120] sm:$0xf]  ;;  %v3740_v11 = vld [vmem:[#allocation5 + $0x12c] sm:$0xf0]  ;;  %v2537_v16 = vor.u32 %v3708_v8, %v2536_v7  ;;  %1710 = vmatpush.bf16.msra.mxu2 %v2809_v6  ;;  %v377_v8 = vunpack.c.l.b16 %v102_v2 }
  0x31   :  { %v2792_v12 = vld [vmem:[#allocation5 + $0x220] sm:$0xf]  ;;  %v3772_v13 = vld [vmem:[#allocation5 + $0x22c] sm:$0xf0]  ;;  %v2665_v19 = vor.u32 %v3740_v11, %v2664_v9  ;;  %1723 = vmatpush.bf16.msra.mxu3 %v2937_v10  ;;  %v378_v10 = vunpack.c.h.b16 %v102_v2 }
  0x32   :  { %v2920_v14 = vld [vmem:[#allocation5 + $0x320] sm:$0xf]  ;;  %v3804_v15 = vld [vmem:[#allocation5 + $0x32c] sm:$0xf0]  ;;  %v2793_v20 = vor.u32 %v3772_v13, %v2792_v12  ;;  %1685 = vmatpush.bf16.msra.mxu0 %v2537_v16 }
  0x33   :  { %v2520_v17 = vld [vmem:[#allocation5] sm:$0xf]  ;;  %v3704_v18 = vld [vmem:[#allocation5 + $0xc] sm:$0xf0]  ;;  %v2921_v24 = vor.u32 %v3804_v15, %v2920_v14  ;;  %1698 = vmatpush.bf16.msra.mxu1 %v2665_v19 }
  0x34   :  { %v2648_v21 = vld [vmem:[#allocation5 + $0x100] sm:$0xf]  ;;  %v3736_v22 = vld [vmem:[#allocation5 + $0x10c] sm:$0xf0]  ;;  %v2521_v31 = vor.u32 %v3704_v18, %v2520_v17  ;;  %1711 = vmatpush.bf16.msra.mxu2 %v2793_v20  ;;  %v4227_v18 = vpack.c.b16 %v377_v8, %v377_v8  ;;  %v4231_v20 = vpack.c.b16 %v378_v10, %v378_v10  ;;  %v3730_v8 = vld [vmem:[#allocation5 + $0xe4] sm:$0xf] }
  0x35   :  { %v2776_v23 = vld [vmem:[#allocation5 + $0x200] sm:$0xf]  ;;  %v3768_v25 = vld [vmem:[#allocation5 + $0x20c] sm:$0xf0]  ;;  %v2649_v35 = vor.u32 %v3736_v22, %v2648_v21  ;;  %1724 = vmatpush.bf16.msra.mxu3 %v2921_v24  ;;  %v3762_v10 = vld [vmem:[#allocation5 + $0x1e4] sm:$0xf] }
  0x36   :  { %v2904_v26 = vld [vmem:[#allocation5 + $0x300] sm:$0xf]  ;;  %v3800_v27 = vld [vmem:[#allocation5 + $0x30c] sm:$0xf0]  ;;  %v2777_v36 = vor.u32 %v3768_v25, %v2776_v23  ;;  %1686 = vmatpush.bf16.msra.mxu0 %v2521_v31 }
  0x37   :  { %v3144_v28 = vld [vmem:[#allocation5 + $0x4e0] sm:$0xf]  ;;  %v3860_v29 = vld [vmem:[#allocation5 + $0x4ec] sm:$0xf0]  ;;  %v2905_v39 = vor.u32 %v3800_v27, %v2904_v26  ;;  %1699 = vmatpush.bf16.msra.mxu1 %v2649_v35 }
  0x38   :  { %v3272_v30 = vld [vmem:[#allocation5 + $0x5e0] sm:$0xf]  ;;  %v3892_v32 = vld [vmem:[#allocation5 + $0x5ec] sm:$0xf0]  ;;  %v3145_v40 = vor.u32 %v3860_v29, %v3144_v28  ;;  %1712 = vmatpush.bf16.msra.mxu2 %v2777_v36 }
  0x39   :  { %v3400_v33 = vld [vmem:[#allocation5 + $0x6e0] sm:$0xf]  ;;  %v3924_v34 = vld [vmem:[#allocation5 + $0x6ec] sm:$0xf0]  ;;  %v3273_v41 = vor.u32 %v3892_v32, %v3272_v30  ;;  %1725 = vmatpush.bf16.msra.mxu3 %v2905_v39 }
  0x3a   :  { %v3528_v37 = vld [vmem:[#allocation5 + $0x7e0] sm:$0xf]  ;;  %v3956_v38 = vld [vmem:[#allocation5 + $0x7ec] sm:$0xf0]  ;;  %v3401_v42 = vor.u32 %v3924_v34, %v3400_v33  ;;  %1731 = vmatpush.bf16.msrb.mxu0 %v3145_v40 }
  0x3b   :  { %v3128_v43 = vld [vmem:[#allocation5 + $0x4c0] sm:$0xf]  ;;  %v3856_v44 = vld [vmem:[#allocation5 + $0x4cc] sm:$0xf0]  ;;  %v3529_v46 = vor.u32 %v3956_v38, %v3528_v37  ;;  %1744 = vmatpush.bf16.msrb.mxu1 %v3273_v41  ;;  %1713 = vmatmul.bf16.vlgmr.msra.gmra.mxu2 %v4227_v18 }
  0x3c   :  { %v3256_v45 = vld [vmem:[#allocation5 + $0x5c0] sm:$0xf]  ;;  %v3888_v47 = vld [vmem:[#allocation5 + $0x5cc] sm:$0xf0]  ;;  %v3129_v52 = vor.u32 %v3856_v44, %v3128_v43  ;;  %1757 = vmatpush.bf16.msrb.mxu2 %v3401_v42  ;;  %1726 = vmatmul.bf16.vlgmr.msra.gmra.mxu3 %v4231_v20 }
  0x3d   :  { %v3384_v48 = vld [vmem:[#allocation5 + $0x6c0] sm:$0xf]  ;;  %v3920_v49 = vld [vmem:[#allocation5 + $0x6cc] sm:$0xf0]  ;;  %v3257_v54 = vor.u32 %v3888_v47, %v3256_v45  ;;  %1770 = vmatpush.bf16.msrb.mxu3 %v3529_v46 }
  0x3e   :  { %v3512_v50 = vld [vmem:[#allocation5 + $0x7c0] sm:$0xf]  ;;  %v3952_v51 = vld [vmem:[#allocation5 + $0x7cc] sm:$0xf0]  ;;  %v3385_v55 = vor.u32 %v3920_v49, %v3384_v48  ;;  %1732 = vmatpush.bf16.msrb.mxu0 %v3129_v52 }
  0x3f   :  { %v3112_v53 = vld [vmem:[#allocation5 + $0x4a0] sm:$0xf]  ;;  %v3852_v56 = vld [vmem:[#allocation5 + $0x4ac] sm:$0xf0]  ;;  %v3513_v59 = vor.u32 %v3952_v51, %v3512_v50  ;;  %1745 = vmatpush.bf16.msrb.mxu1 %v3257_v54 }
  0x40   :  { %v3240_v57 = vld [vmem:[#allocation5 + $0x5a0] sm:$0xf]  ;;  %v3884_v58 = vld [vmem:[#allocation5 + $0x5ac] sm:$0xf0]  ;;  %v3113_v0 = vor.u32 %v3852_v56, %v3112_v53  ;;  %1758 = vmatpush.bf16.msrb.mxu2 %v3385_v55 }
  0x41   :  { %v3368_v60 = vld [vmem:[#allocation5 + $0x6a0] sm:$0xf]  ;;  %v3916_v61 = vld [vmem:[#allocation5 + $0x6ac] sm:$0xf0]  ;;  %v3241_v1 = vor.u32 %v3884_v58, %v3240_v57  ;;  %1771 = vmatpush.bf16.msrb.mxu3 %v3513_v59 }
  0x42   :  { %v3496_v62 = vld [vmem:[#allocation5 + $0x7a0] sm:$0xf]  ;;  %v3948_v63 = vld [vmem:[#allocation5 + $0x7ac] sm:$0xf0]  ;;  %v3369_v4 = vor.u32 %v3916_v61, %v3368_v60  ;;  %1733 = vmatpush.bf16.msrb.mxu0 %v3113_v0 }
  0x43   :  { %v101_v3 = vld [vmem:[#allocation2] sm:$0xff]  ;;  %v3848_v6 = vld [vmem:[#allocation5 + $0x48c] sm:$0xf0]  ;;  %v3497_v11 = vor.u32 %v3948_v63, %v3496_v62  ;;  %1746 = vmatpush.bf16.msrb.mxu1 %v3241_v1 }
  0x44   :  { %v3096_v5 = vld [vmem:[#allocation5 + $0x480] sm:$0xf]  ;;  %v375_v9 = vunpack.c.l.b16 %v101_v3  ;;  %v3880_v12 = vld [vmem:[#allocation5 + $0x58c] sm:$0xf0]  ;;  %v376_v15 = vunpack.c.h.b16 %v101_v3  ;;  %1759 = vmatpush.bf16.msrb.mxu2 %v3369_v4  ;;  %v104_v3 = vld [vmem:[#allocation2 + $0x18] sm:$0xff] }
  0x45   :  { %v3224_v7 = vld [vmem:[#allocation5 + $0x580] sm:$0xf]  ;;  %v3912_v14 = vld [vmem:[#allocation5 + $0x68c] sm:$0xf0]  ;;  %v3097_v21 = vor.u32 %v3848_v6, %v3096_v5  ;;  %1772 = vmatpush.bf16.msrb.mxu3 %v3497_v11 }
  0x46   :  { %v3352_v13 = vld [vmem:[#allocation5 + $0x680] sm:$0xf]  ;;  %v3944_v17 = vld [vmem:[#allocation5 + $0x78c] sm:$0xf0]  ;;  %v4229_v19 = vpack.c.b16 %v375_v9, %v375_v9  ;;  %v4233_v22 = vpack.c.b16 %v376_v15, %v376_v15  ;;  %v3225_v23 = vor.u32 %v3880_v12, %v3224_v7  ;;  %v2634_v9 = vld [vmem:[#allocation5 + $0xf0] sm:$0xf0]  ;;  %v381_v15 = vunpack.c.l.b16 %v104_v3 }
  0x47   :  { %v3480_v16 = vld [vmem:[#allocation5 + $0x780] sm:$0xf]  ;;  %v3353_v24 = vor.u32 %v3912_v14, %v3352_v13  ;;  %v3844_v26 = vld [vmem:[#allocation5 + $0x46c] sm:$0xf0]  ;;  %1734 = vmatpush.bf16.msrb.mxu0 %v3097_v21  ;;  %v2762_v12 = vld [vmem:[#allocation5 + $0x1f0] sm:$0xf0] }
  0x48   :  { %v3080_v25 = vld [vmem:[#allocation5 + $0x460] sm:$0xf]  ;;  %v3481_v28 = vor.u32 %v3944_v17, %v3480_v16  ;;  %v3876_v29 = vld [vmem:[#allocation5 + $0x56c] sm:$0xf0]  ;;  %1687 = vmatmul.bf16.vlgmr.msra.gmra.mxu0 %v4229_v19  ;;  %1700 = vmatmul.bf16.vlgmr.msra.gmra.mxu1 %v4233_v22  ;;  %v3794_v13 = vld [vmem:[#allocation5 + $0x2e4] sm:$0xf] }
  0x49   :  { %v3208_v27 = vld [vmem:[#allocation5 + $0x560] sm:$0xf]  ;;  %v3908_v31 = vld [vmem:[#allocation5 + $0x66c] sm:$0xf0]  ;;  %v3081_v34 = vor.u32 %v3844_v26, %v3080_v25  ;;  %1747 = vmatpush.bf16.msrb.mxu1 %v3225_v23  ;;  %1760 = vmatpush.bf16.msrb.mxu2 %v3353_v24  ;;  %v2890_v14 = vld [vmem:[#allocation5 + $0x2f0] sm:$0xf0]  ;;  %v382_v25 = vunpack.c.h.b16 %v104_v3 }
  0x4a   :  { %v3336_v30 = vld [vmem:[#allocation5 + $0x660] sm:$0xf]  ;;  %v3940_v33 = vld [vmem:[#allocation5 + $0x76c] sm:$0xf0]  ;;  %v3209_v35 = vor.u32 %v3876_v29, %v3208_v27  ;;  %1773 = vmatpush.bf16.msrb.mxu3 %v3481_v28  ;;  %v3826_v21 = vld [vmem:[#allocation5 + $0x3e4] sm:$0xf]  ;;  %v2637_v27 = vor.u32 %v3730_v8, %v2634_v9  ;;  %v2765_v29 = vor.u32 %v3762_v10, %v2762_v12 }
  0x4b   :  { %v3464_v32 = vld [vmem:[#allocation5 + $0x760] sm:$0xf]  ;;  %v3337_v36 = vor.u32 %v3908_v31, %v3336_v30  ;;  %v3840_v38 = vld [vmem:[#allocation5 + $0x44c] sm:$0xf0]  ;;  %1735 = vmatpush.bf16.msrb.mxu0 %v3081_v34  ;;  %v3018_v23 = vld [vmem:[#allocation5 + $0x3f0] sm:$0xf0]  ;;  %v2893_v30 = vor.u32 %v3794_v13, %v2890_v14 }
  0x4c   :  { %v3064_v37 = vld [vmem:[#allocation5 + $0x440] sm:$0xf]  ;;  %v3465_v40 = vor.u32 %v3940_v33, %v3464_v32  ;;  %v3872_v41 = vld [vmem:[#allocation5 + $0x54c] sm:$0xf0]  ;;  %v3726_v31 = vld [vmem:[#allocation5 + $0xc4] sm:$0xf]  ;;  %v3021_v34 = vor.u32 %v3826_v21, %v3018_v23 }
  0x4d   :  { %v3192_v39 = vld [vmem:[#allocation5 + $0x540] sm:$0xf]  ;;  %v3904_v43 = vld [vmem:[#allocation5 + $0x64c] sm:$0xf0]  ;;  %v3065_v46 = vor.u32 %v3840_v38, %v3064_v37  ;;  %1748 = vmatpush.bf16.msrb.mxu1 %v3209_v35  ;;  %1761 = vmatpush.bf16.msrb.mxu2 %v3337_v36  ;;  %v2618_v32 = vld [vmem:[#allocation5 + $0xd0] sm:$0xf0]  ;;  %v4239_v38 = vpack.c.b16 %v381_v15, %v381_v15 }
  0x4e   :  { %v3320_v42 = vld [vmem:[#allocation5 + $0x640] sm:$0xf]  ;;  %v3936_v45 = vld [vmem:[#allocation5 + $0x74c] sm:$0xf0]  ;;  %v3193_v47 = vor.u32 %v3872_v41, %v3192_v39  ;;  %1774 = vmatpush.bf16.msrb.mxu3 %v3465_v40  ;;  %v3758_v33 = vld [vmem:[#allocation5 + $0x1c4] sm:$0xf] }
  0x4f   :  { %v3448_v44 = vld [vmem:[#allocation5 + $0x740] sm:$0xf]  ;;  %v3321_v48 = vor.u32 %v3904_v43, %v3320_v42  ;;  %v3836_v50 = vld [vmem:[#allocation5 + $0x42c] sm:$0xf0]  ;;  %1736 = vmatpush.bf16.msrb.mxu0 %v3065_v46  ;;  %v2746_v35 = vld [vmem:[#allocation5 + $0x1d0] sm:$0xf0]  ;;  %v4243_v42 = vpack.c.b16 %v382_v25, %v382_v25  ;;  %v2621_v43 = vor.u32 %v3726_v31, %v2618_v32 }
  0x50   :  { %v3048_v49 = vld [vmem:[#allocation5 + $0x420] sm:$0xf]  ;;  %v3449_v52 = vor.u32 %v3936_v45, %v3448_v44  ;;  %v3868_v53 = vld [vmem:[#allocation5 + $0x52c] sm:$0xf0]  ;;  %v3790_v36 = vld [vmem:[#allocation5 + $0x2c4] sm:$0xf]  ;;  %v2749_v45 = vor.u32 %v3758_v33, %v2746_v35 }
  0x51   :  { %v3176_v51 = vld [vmem:[#allocation5 + $0x520] sm:$0xf]  ;;  %v3900_v55 = vld [vmem:[#allocation5 + $0x62c] sm:$0xf0]  ;;  %v3049_v59 = vor.u32 %v3836_v50, %v3048_v49  ;;  %1749 = vmatpush.bf16.msrb.mxu1 %v3193_v47  ;;  %1762 = vmatpush.bf16.msrb.mxu2 %v3321_v48  ;;  %v2874_v37 = vld [vmem:[#allocation5 + $0x2d0] sm:$0xf0] }
  0x52   :  { %v3304_v54 = vld [vmem:[#allocation5 + $0x620] sm:$0xf]  ;;  %v3932_v57 = vld [vmem:[#allocation5 + $0x72c] sm:$0xf0]  ;;  %v3177_v63 = vor.u32 %v3868_v53, %v3176_v51  ;;  %1775 = vmatpush.bf16.msrb.mxu3 %v3449_v52  ;;  %v3822_v39 = vld [vmem:[#allocation5 + $0x3c4] sm:$0xf]  ;;  %v2877_v46 = vor.u32 %v3790_v36, %v2874_v37 }
  0x53   :  { %v3432_v56 = vld [vmem:[#allocation5 + $0x720] sm:$0xf]  ;;  %v3832_v60 = vld [vmem:[#allocation5 + $0x40c] sm:$0xf0]  ;;  %v3305_v0 = vor.u32 %v3900_v55, %v3304_v54  ;;  %1737 = vmatpush.bf16.msrb.mxu0 %v3049_v59  ;;  %v3002_v40 = vld [vmem:[#allocation5 + $0x3d0] sm:$0xf0] }
  0x54   :  { %v3032_v58 = vld [vmem:[#allocation5 + $0x400] sm:$0xf]  ;;  %v3864_v62 = vld [vmem:[#allocation5 + $0x50c] sm:$0xf0]  ;;  %v3433_v4 = vor.u32 %v3932_v57, %v3432_v56  ;;  %v3722_v47 = vld [vmem:[#allocation5 + $0xa4] sm:$0xf]  ;;  %v3005_v50 = vor.u32 %v3822_v39, %v3002_v40 }
  0x55   :  { %v3160_v61 = vld [vmem:[#allocation5 + $0x500] sm:$0xf]  ;;  %v3896_v2 = vld [vmem:[#allocation5 + $0x60c] sm:$0xf0]  ;;  %v3033_v11 = vor.u32 %v3832_v60, %v3032_v58  ;;  %1750 = vmatpush.bf16.msrb.mxu1 %v3177_v63  ;;  %1763 = vmatpush.bf16.msrb.mxu2 %v3305_v0  ;;  %v2602_v48 = vld [vmem:[#allocation5 + $0xb0] sm:$0xf0] }
  0x56   :  { %v3288_v1 = vld [vmem:[#allocation5 + $0x600] sm:$0xf]  ;;  %v3928_v6 = vld [vmem:[#allocation5 + $0x70c] sm:$0xf0]  ;;  %v3161_v16 = vor.u32 %v3864_v62, %v3160_v61  ;;  %1776 = vmatpush.bf16.msrb.mxu3 %v3433_v4  ;;  %v3754_v49 = vld [vmem:[#allocation5 + $0x1a4] sm:$0xf]  ;;  %v2605_v56 = vor.u32 %v3722_v47, %v2602_v48 }
  0x57   :  { %v3416_v5 = vld [vmem:[#allocation5 + $0x700] sm:$0xf]  ;;  %v103_v7 = vld [vmem:[#allocation2 + $0x10] sm:$0xff]  ;;  %v3289_v17 = vor.u32 %v3896_v2, %v3288_v1  ;;  %1738 = vmatpush.bf16.msrb.mxu0 %v3033_v11  ;;  %v3786_v52 = vld [vmem:[#allocation5 + $0x2a4] sm:$0xf] }
  0x58   :  { %v379_v24 = vunpack.c.l.b16 %v103_v7  ;;  %v3417_v26 = vor.u32 %v3928_v6, %v3416_v5  ;;  %v380_v28 = vunpack.c.h.b16 %v103_v7  ;;  %v2730_v51 = vld [vmem:[#allocation5 + $0x1b0] sm:$0xf0]  ;;  %v3818_v54 = vld [vmem:[#allocation5 + $0x3a4] sm:$0xf] }
  0x59   :  { %1751 = vmatpush.bf16.msrb.mxu1 %v3161_v16  ;;  %1764 = vmatpush.bf16.msrb.mxu2 %v3289_v17  ;;  %v2858_v53 = vld [vmem:[#allocation5 + $0x2b0] sm:$0xf0]  ;;  %v2733_v57 = vor.u32 %v3754_v49, %v2730_v51  ;;  %v3718_v59 = vld [vmem:[#allocation5 + $0x84] sm:$0xf] }
  0x5a   :  { %v4241_v41 = vpack.c.b16 %v379_v24, %v379_v24  ;;  %1777 = vmatpush.bf16.msrb.mxu3 %v3417_v26  ;;  %v4245_v44 = vpack.c.b16 %v380_v28, %v380_v28  ;;  %v2986_v55 = vld [vmem:[#allocation5 + $0x3b0] sm:$0xf0]  ;;  %v2861_v58 = vor.u32 %v3786_v52, %v2858_v53  ;;  %v3750_v61 = vld [vmem:[#allocation5 + $0x184] sm:$0xf] }
  0x5b   :  { %1783 = vmatpush.bf16.msra.mxu0 %v2637_v27  ;;  %v2586_v60 = vld [vmem:[#allocation5 + $0x90] sm:$0xf0]  ;;  %v2989_v62 = vor.u32 %v3818_v54, %v2986_v55  ;;  %v3782_v0 = vld [vmem:[#allocation5 + $0x284] sm:$0xf] }
  0x5c   :  { %1765 = vmatmul.bf16.vlgmr.msrb.gmra.mxu2 %v4239_v38  ;;  %1739 = vmatmul.bf16.vlgmr.msrb.gmra.mxu0 %v4241_v41  ;;  %v2714_v63 = vld [vmem:[#allocation5 + $0x190] sm:$0xf0]  ;;  %v3814_v2 = vld [vmem:[#allocation5 + $0x384] sm:$0xf]  ;;  %v2589_v4 = vor.u32 %v3718_v59, %v2586_v60 }
  0x5d   :  { %1796 = vmatpush.bf16.msra.mxu1 %v2765_v29  ;;  %1809 = vmatpush.bf16.msra.mxu2 %v2893_v30  ;;  %v2842_v1 = vld [vmem:[#allocation5 + $0x290] sm:$0xf0]  ;;  %v2717_v5 = vor.u32 %v3750_v61, %v2714_v63  ;;  %v3714_v7 = vld [vmem:[#allocation5 + $0x64] sm:$0xf] }
  0x5e   :  { %1822 = vmatpush.bf16.msra.mxu3 %v3021_v34  ;;  %1752 = vmatmul.bf16.vlgmr.msrb.gmra.mxu1 %v4245_v44  ;;  %v2970_v3 = vld [vmem:[#allocation5 + $0x390] sm:$0xf0]  ;;  %v2845_v6 = vor.u32 %v3782_v0, %v2842_v1  ;;  %v3746_v9 = vld [vmem:[#allocation5 + $0x164] sm:$0xf] }
  0x5f   :  { %1778 = vmatmul.bf16.vlgmr.msrb.gmra.mxu3 %v4243_v42  ;;  %1784 = vmatpush.bf16.msra.mxu0 %v2621_v43  ;;  %v2570_v8 = vld [vmem:[#allocation5 + $0x70] sm:$0xf0]  ;;  %v2973_v10 = vor.u32 %v3814_v2, %v2970_v3  ;;  %v3778_v12 = vld [vmem:[#allocation5 + $0x264] sm:$0xf] }
  0x60   :  { %v2698_v11 = vld [vmem:[#allocation5 + $0x170] sm:$0xf0]  ;;  %v3810_v14 = vld [vmem:[#allocation5 + $0x364] sm:$0xf]  ;;  %v2573_v16 = vor.u32 %v3714_v7, %v2570_v8 }
  0x61   :  { %1797 = vmatpush.bf16.msra.mxu1 %v2749_v45  ;;  %1810 = vmatpush.bf16.msra.mxu2 %v2877_v46  ;;  %v2826_v13 = vld [vmem:[#allocation5 + $0x270] sm:$0xf0]  ;;  %v2701_v17 = vor.u32 %v3746_v9, %v2698_v11  ;;  %v3710_v23 = vld [vmem:[#allocation5 + $0x44] sm:$0xf] }
  0x62   :  { %1823 = vmatpush.bf16.msra.mxu3 %v3005_v50  ;;  %v2954_v15 = vld [vmem:[#allocation5 + $0x370] sm:$0xf0]  ;;  %v2829_v21 = vor.u32 %v3778_v12, %v2826_v13  ;;  %v3742_v25 = vld [vmem:[#allocation5 + $0x144] sm:$0xf] }
  0x63   :  { %1785 = vmatpush.bf16.msra.mxu0 %v2605_v56  ;;  %v2554_v24 = vld [vmem:[#allocation5 + $0x50] sm:$0xf0]  ;;  %v2957_v26 = vor.u32 %v3810_v14, %v2954_v15  ;;  %v3774_v28 = vld [vmem:[#allocation5 + $0x244] sm:$0xf] }
  0x64   :  { %v2682_v27 = vld [vmem:[#allocation5 + $0x150] sm:$0xf0]  ;;  %v3806_v30 = vld [vmem:[#allocation5 + $0x344] sm:$0xf]  ;;  %v2557_v32 = vor.u32 %v3710_v23, %v2554_v24 }
  0x65   :  { %1798 = vmatpush.bf16.msra.mxu1 %v2733_v57  ;;  %1811 = vmatpush.bf16.msra.mxu2 %v2861_v58  ;;  %v2810_v29 = vld [vmem:[#allocation5 + $0x250] sm:$0xf0]  ;;  %v2685_v33 = vor.u32 %v3742_v25, %v2682_v27  ;;  %v3706_v35 = vld [vmem:[#allocation5 + $0x24] sm:$0xf] }
  0x66   :  { %1824 = vmatpush.bf16.msra.mxu3 %v2989_v62  ;;  %v2938_v31 = vld [vmem:[#allocation5 + $0x350] sm:$0xf0]  ;;  %v2813_v34 = vor.u32 %v3774_v28, %v2810_v29  ;;  %v3738_v37 = vld [vmem:[#allocation5 + $0x124] sm:$0xf] }
  0x67   :  { %1786 = vmatpush.bf16.msra.mxu0 %v2589_v4  ;;  %v2538_v36 = vld [vmem:[#allocation5 + $0x30] sm:$0xf0]  ;;  %v2941_v39 = vor.u32 %v3806_v30, %v2938_v31  ;;  %v3770_v43 = vld [vmem:[#allocation5 + $0x224] sm:$0xf] }
  0x68   :  { %v2666_v40 = vld [vmem:[#allocation5 + $0x130] sm:$0xf0]  ;;  %v3802_v46 = vld [vmem:[#allocation5 + $0x324] sm:$0xf]  ;;  %v2541_v48 = vor.u32 %v3706_v35, %v2538_v36 }
  0x69   :  { %1799 = vmatpush.bf16.msra.mxu1 %v2717_v5  ;;  %1812 = vmatpush.bf16.msra.mxu2 %v2845_v6  ;;  %v2794_v45 = vld [vmem:[#allocation5 + $0x230] sm:$0xf0]  ;;  %v3702_v49 = vld [vmem:[#allocation5 + $0x4] sm:$0xf]  ;;  %v2669_v51 = vor.u32 %v3738_v37, %v2666_v40 }
  0x6a   :  { %1825 = vmatpush.bf16.msra.mxu3 %v2973_v10  ;;  %v2922_v47 = vld [vmem:[#allocation5 + $0x330] sm:$0xf0]  ;;  %v2797_v52 = vor.u32 %v3770_v43, %v2794_v45  ;;  %v3734_v53 = vld [vmem:[#allocation5 + $0x104] sm:$0xf] }
  0x6b   :  { %1787 = vmatpush.bf16.msra.mxu0 %v2573_v16  ;;  %v2522_v50 = vld [vmem:[#allocation5 + $0x10] sm:$0xf0]  ;;  %v3766_v55 = vld [vmem:[#allocation5 + $0x204] sm:$0xf]  ;;  %v2925_v56 = vor.u32 %v3802_v46, %v2922_v47 }
  0x6c   :  { %v2650_v54 = vld [vmem:[#allocation5 + $0x110] sm:$0xf0]  ;;  %v3798_v58 = vld [vmem:[#allocation5 + $0x304] sm:$0xf]  ;;  %v2525_v63 = vor.u32 %v3702_v49, %v2522_v50 }
  0x6d   :  { %1800 = vmatpush.bf16.msra.mxu1 %v2701_v17  ;;  %1813 = vmatpush.bf16.msra.mxu2 %v2829_v21  ;;  %v2778_v57 = vld [vmem:[#allocation5 + $0x210] sm:$0xf0]  ;;  %v3858_v60 = vld [vmem:[#allocation5 + $0x4e4] sm:$0xf]  ;;  %v2653_v3 = vor.u32 %v3734_v53, %v2650_v54 }
  0x6e   :  { %1826 = vmatpush.bf16.msra.mxu3 %v2957_v26  ;;  %v2906_v59 = vld [vmem:[#allocation5 + $0x310] sm:$0xf0]  ;;  %v3890_v62 = vld [vmem:[#allocation5 + $0x5e4] sm:$0xf]  ;;  %v2781_v4 = vor.u32 %v3766_v55, %v2778_v57 }
  0x6f   :  { %1788 = vmatpush.bf16.msra.mxu0 %v2557_v32  ;;  %v3146_v61 = vld [vmem:[#allocation5 + $0x4f0] sm:$0xf0]  ;;  %v3922_v1 = vld [vmem:[#allocation5 + $0x6e4] sm:$0xf]  ;;  %v2909_v7 = vor.u32 %v3798_v58, %v2906_v59 }
  0x70   :  { %v3274_v0 = vld [vmem:[#allocation5 + $0x5f0] sm:$0xf0]  ;;  %v3954_v5 = vld [vmem:[#allocation5 + $0x7e4] sm:$0xf]  ;;  %v3149_v8 = vor.u32 %v3858_v60, %v3146_v61 }
  0x71   :  { %1801 = vmatpush.bf16.msra.mxu1 %v2685_v33  ;;  %1814 = vmatpush.bf16.msra.mxu2 %v2813_v34  ;;  %v3402_v2 = vld [vmem:[#allocation5 + $0x6f0] sm:$0xf0]  ;;  %v3277_v9 = vor.u32 %v3890_v62, %v3274_v0  ;;  %v3854_v11 = vld [vmem:[#allocation5 + $0x4c4] sm:$0xf] }
  0x72   :  { %1827 = vmatpush.bf16.msra.mxu3 %v2941_v39  ;;  %v3530_v6 = vld [vmem:[#allocation5 + $0x7f0] sm:$0xf0]  ;;  %v3405_v10 = vor.u32 %v3922_v1, %v3402_v2  ;;  %v3886_v13 = vld [vmem:[#allocation5 + $0x5c4] sm:$0xf] }
  0x73   :  { %1789 = vmatpush.bf16.msra.mxu0 %v2541_v48  ;;  %v3130_v12 = vld [vmem:[#allocation5 + $0x4d0] sm:$0xf0]  ;;  %v3533_v14 = vor.u32 %v3954_v5, %v3530_v6  ;;  %v3918_v16 = vld [vmem:[#allocation5 + $0x6c4] sm:$0xf] }
  0x74   :  { %v3258_v15 = vld [vmem:[#allocation5 + $0x5d0] sm:$0xf0]  ;;  %v3950_v21 = vld [vmem:[#allocation5 + $0x7c4] sm:$0xf]  ;;  %v3133_v24 = vor.u32 %v3854_v11, %v3130_v12 }
  0x75   :  { %1802 = vmatpush.bf16.msra.mxu1 %v2669_v51  ;;  %1815 = vmatpush.bf16.msra.mxu2 %v2797_v52  ;;  %v3386_v17 = vld [vmem:[#allocation5 + $0x6d0] sm:$0xf0]  ;;  %v3261_v25 = vor.u32 %v3886_v13, %v3258_v15  ;;  %v3850_v27 = vld [vmem:[#allocation5 + $0x4a4] sm:$0xf] }
  0x76   :  { %1828 = vmatpush.bf16.msra.mxu3 %v2925_v56  ;;  %v3514_v23 = vld [vmem:[#allocation5 + $0x7d0] sm:$0xf0]  ;;  %v3389_v26 = vor.u32 %v3918_v16, %v3386_v17  ;;  %v3882_v29 = vld [vmem:[#allocation5 + $0x5a4] sm:$0xf] }
  0x77   :  { %1790 = vmatpush.bf16.msra.mxu0 %v2525_v63  ;;  %v3114_v28 = vld [vmem:[#allocation5 + $0x4b0] sm:$0xf0]  ;;  %v3517_v30 = vor.u32 %v3950_v21, %v3514_v23  ;;  %v3914_v32 = vld [vmem:[#allocation5 + $0x6a4] sm:$0xf] }
  0x78   :  { %v3242_v31 = vld [vmem:[#allocation5 + $0x5b0] sm:$0xf0]  ;;  %v3946_v34 = vld [vmem:[#allocation5 + $0x7a4] sm:$0xf]  ;;  %v3117_v36 = vor.u32 %v3850_v27, %v3114_v28 }
  0x79   :  { %1803 = vmatpush.bf16.msra.mxu1 %v2653_v3  ;;  %1816 = vmatpush.bf16.msra.mxu2 %v2781_v4  ;;  %v3370_v33 = vld [vmem:[#allocation5 + $0x6b0] sm:$0xf0]  ;;  %v3245_v37 = vor.u32 %v3882_v29, %v3242_v31  ;;  %v3846_v40 = vld [vmem:[#allocation5 + $0x484] sm:$0xf] }
  0x7a   :  { %1829 = vmatpush.bf16.msra.mxu3 %v2909_v7  ;;  %v3498_v35 = vld [vmem:[#allocation5 + $0x7b0] sm:$0xf0]  ;;  %1791 = vmatmul.bf16.vlgmr.msra.gmra.mxu0 %v4229_v19  ;;  %v3373_v39 = vor.u32 %v3914_v32, %v3370_v33  ;;  %v3878_v45 = vld [vmem:[#allocation5 + $0x584] sm:$0xf] }
  0x7b   :  { %1835 = vmatpush.bf16.msrb.mxu0 %v3149_v8  ;;  %v3098_v43 = vld [vmem:[#allocation5 + $0x490] sm:$0xf0]  ;;  %v3501_v46 = vor.u32 %v3946_v34, %v3498_v35  ;;  %v3910_v48 = vld [vmem:[#allocation5 + $0x684] sm:$0xf] }
  0x7c   :  { %1817 = vmatmul.bf16.vlgmr.msra.gmra.mxu2 %v4227_v18  ;;  %1804 = vmatmul.bf16.vlgmr.msra.gmra.mxu1 %v4233_v22  ;;  %v3226_v47 = vld [vmem:[#allocation5 + $0x590] sm:$0xf0]  ;;  %v3942_v50 = vld [vmem:[#allocation5 + $0x784] sm:$0xf]  ;;  %v3101_v52 = vor.u32 %v3846_v40, %v3098_v43  ;;  %v2640_v43 = vld [vmem:[#allocation5 + $0xe8] sm:$0xf] }
  0x7d   :  { %1848 = vmatpush.bf16.msrb.mxu1 %v3277_v9  ;;  %1861 = vmatpush.bf16.msrb.mxu2 %v3405_v10  ;;  %v3354_v49 = vld [vmem:[#allocation5 + $0x690] sm:$0xf0]  ;;  %v3229_v53 = vor.u32 %v3878_v45, %v3226_v47  ;;  %v3842_v55 = vld [vmem:[#allocation5 + $0x464] sm:$0xf]  ;;  %v3733_v45 = vld [vmem:[#allocation5 + $0xf4] sm:$0xf0] }
  0x7e   :  { %1874 = vmatpush.bf16.msrb.mxu3 %v3533_v14  ;;  %v3482_v51 = vld [vmem:[#allocation5 + $0x790] sm:$0xf0]  ;;  %v3357_v54 = vor.u32 %v3910_v48, %v3354_v49  ;;  %v3874_v57 = vld [vmem:[#allocation5 + $0x564] sm:$0xf]  ;;  %v3765_v48 = vld [vmem:[#allocation5 + $0x1f4] sm:$0xf0] }
  0x7f   :  { %1830 = vmatmul.bf16.vlgmr.msra.gmra.mxu3 %v4231_v20  ;;  %1836 = vmatpush.bf16.msrb.mxu0 %v3133_v24  ;;  %v3082_v56 = vld [vmem:[#allocation5 + $0x470] sm:$0xf0]  ;;  %v3485_v58 = vor.u32 %v3942_v50, %v3482_v51  ;;  %v3906_v60 = vld [vmem:[#allocation5 + $0x664] sm:$0xf]  ;;  %v2896_v49 = vld [vmem:[#allocation5 + $0x2e8] sm:$0xf] }
  0x80   :  { %v3210_v59 = vld [vmem:[#allocation5 + $0x570] sm:$0xf0]  ;;  %v3938_v62 = vld [vmem:[#allocation5 + $0x764] sm:$0xf]  ;;  %v3085_v0 = vor.u32 %v3842_v55, %v3082_v56  ;;  %v3797_v50 = vld [vmem:[#allocation5 + $0x2f4] sm:$0xf0]  ;;  %v2641_v56 = vor.u32 %v3733_v45, %v2640_v43 }
  0x81   :  { %1849 = vmatpush.bf16.msrb.mxu1 %v3261_v25  ;;  %1862 = vmatpush.bf16.msrb.mxu2 %v3389_v26  ;;  %v3338_v61 = vld [vmem:[#allocation5 + $0x670] sm:$0xf0]  ;;  %v3213_v1 = vor.u32 %v3874_v57, %v3210_v59  ;;  %v3838_v3 = vld [vmem:[#allocation5 + $0x444] sm:$0xf]  ;;  %v2624_v59 = vld [vmem:[#allocation5 + $0xc8] sm:$0xf] }
  0x82   :  { %1875 = vmatpush.bf16.msrb.mxu3 %v3517_v30  ;;  %v3466_v63 = vld [vmem:[#allocation5 + $0x770] sm:$0xf0]  ;;  %v3341_v2 = vor.u32 %v3906_v60, %v3338_v61  ;;  %v3870_v5 = vld [vmem:[#allocation5 + $0x544] sm:$0xf]  ;;  %v3729_v60 = vld [vmem:[#allocation5 + $0xd4] sm:$0xf0] }
  0x83   :  { %1837 = vmatpush.bf16.msrb.mxu0 %v3117_v36  ;;  %v3066_v4 = vld [vmem:[#allocation5 + $0x450] sm:$0xf0]  ;;  %v3469_v6 = vor.u32 %v3938_v62, %v3466_v63  ;;  %v3902_v8 = vld [vmem:[#allocation5 + $0x644] sm:$0xf]  ;;  %v2752_v61 = vld [vmem:[#allocation5 + $0x1c8] sm:$0xf] }
  0x84   :  { %v3194_v7 = vld [vmem:[#allocation5 + $0x550] sm:$0xf0]  ;;  %v3934_v10 = vld [vmem:[#allocation5 + $0x744] sm:$0xf]  ;;  %v3069_v12 = vor.u32 %v3838_v3, %v3066_v4  ;;  %v3761_v63 = vld [vmem:[#allocation5 + $0x1d4] sm:$0xf0]  ;;  %v2625_v4 = vor.u32 %v3729_v60, %v2624_v59 }
  0x85   :  { %1850 = vmatpush.bf16.msrb.mxu1 %v3245_v37  ;;  %1863 = vmatpush.bf16.msrb.mxu2 %v3373_v39  ;;  %v3322_v9 = vld [vmem:[#allocation5 + $0x650] sm:$0xf0]  ;;  %v3197_v13 = vor.u32 %v3870_v5, %v3194_v7  ;;  %v3834_v15 = vld [vmem:[#allocation5 + $0x424] sm:$0xf]  ;;  %v3825_v3 = vld [vmem:[#allocation5 + $0x3d4] sm:$0xf0]  ;;  %v2753_v5 = vor.u32 %v3761_v63, %v2752_v61 }
  0x86   :  { %1876 = vmatpush.bf16.msrb.mxu3 %v3501_v46  ;;  %v3450_v11 = vld [vmem:[#allocation5 + $0x750] sm:$0xf0]  ;;  %v3325_v14 = vor.u32 %v3902_v8, %v3322_v9  ;;  %v3866_v17 = vld [vmem:[#allocation5 + $0x524] sm:$0xf]  ;;  %v2768_v46 = vld [vmem:[#allocation5 + $0x1e8] sm:$0xf] }
  0x87   :  { %1838 = vmatpush.bf16.msrb.mxu0 %v3101_v52  ;;  %v3050_v16 = vld [vmem:[#allocation5 + $0x430] sm:$0xf0]  ;;  %v3453_v21 = vor.u32 %v3934_v10, %v3450_v11  ;;  %v3898_v24 = vld [vmem:[#allocation5 + $0x624] sm:$0xf]  ;;  %v2769_v57 = vor.u32 %v3765_v48, %v2768_v46  ;;  %v2608_v7 = vld [vmem:[#allocation5 + $0xa8] sm:$0xf] }
  0x88   :  { %v3178_v23 = vld [vmem:[#allocation5 + $0x530] sm:$0xf0]  ;;  %v3930_v26 = vld [vmem:[#allocation5 + $0x724] sm:$0xf]  ;;  %v3053_v28 = vor.u32 %v3834_v15, %v3050_v16  ;;  %v3725_v8 = vld [vmem:[#allocation5 + $0xb4] sm:$0xf0] }
  0x89   :  { %1851 = vmatpush.bf16.msrb.mxu1 %v3229_v53  ;;  %1864 = vmatpush.bf16.msrb.mxu2 %v3357_v54  ;;  %v3306_v25 = vld [vmem:[#allocation5 + $0x630] sm:$0xf0]  ;;  %v3830_v29 = vld [vmem:[#allocation5 + $0x404] sm:$0xf]  ;;  %v3181_v31 = vor.u32 %v3866_v17, %v3178_v23  ;;  %v3024_v53 = vld [vmem:[#allocation5 + $0x3e8] sm:$0xf]  ;;  %v2609_v16 = vor.u32 %v3725_v8, %v2608_v7 }
  0x8a   :  { %1877 = vmatpush.bf16.msrb.mxu3 %v3485_v58  ;;  %v3434_v27 = vld [vmem:[#allocation5 + $0x730] sm:$0xf0]  ;;  %v3309_v32 = vor.u32 %v3898_v24, %v3306_v25  ;;  %v3862_v33 = vld [vmem:[#allocation5 + $0x504] sm:$0xf]  ;;  %v3829_v54 = vld [vmem:[#allocation5 + $0x3f4] sm:$0xf0]  ;;  %v2897_v58 = vor.u32 %v3797_v50, %v2896_v49 }
  0x8b   :  { %1839 = vmatpush.bf16.msrb.mxu0 %v3085_v0  ;;  %v3034_v30 = vld [vmem:[#allocation5 + $0x410] sm:$0xf0]  ;;  %v3894_v35 = vld [vmem:[#allocation5 + $0x604] sm:$0xf]  ;;  %v3437_v36 = vor.u32 %v3930_v26, %v3434_v27  ;;  %v3025_v62 = vor.u32 %v3829_v54, %v3024_v53  ;;  %v2880_v0 = vld [vmem:[#allocation5 + $0x2c8] sm:$0xf] }
  0x8c   :  { %v3162_v34 = vld [vmem:[#allocation5 + $0x510] sm:$0xf0]  ;;  %v3926_v39 = vld [vmem:[#allocation5 + $0x704] sm:$0xf]  ;;  %v3037_v47 = vor.u32 %v3830_v29, %v3034_v30  ;;  %v2736_v9 = vld [vmem:[#allocation5 + $0x1a8] sm:$0xf] }
  0x8d   :  { %1852 = vmatpush.bf16.msrb.mxu1 %v3213_v1  ;;  %1865 = vmatpush.bf16.msrb.mxu2 %v3341_v2  ;;  %v3290_v37 = vld [vmem:[#allocation5 + $0x610] sm:$0xf0]  ;;  %v3165_v51 = vor.u32 %v3862_v33, %v3162_v34  ;;  %v3793_v1 = vld [vmem:[#allocation5 + $0x2d4] sm:$0xf0]  ;;  %v3008_v2 = vld [vmem:[#allocation5 + $0x3c8] sm:$0xf] }
  0x8e   :  { %1878 = vmatpush.bf16.msrb.mxu3 %v3469_v6  ;;  %v3418_v40 = vld [vmem:[#allocation5 + $0x710] sm:$0xf0]  ;;  %v3293_v52 = vor.u32 %v3894_v35, %v3290_v37  ;;  %v2881_v6 = vor.u32 %v3793_v1, %v2880_v0  ;;  %v3009_v10 = vor.u32 %v3825_v3, %v3008_v2  ;;  %v3757_v11 = vld [vmem:[#allocation5 + $0x1b4] sm:$0xf0]  ;;  %v2592_v23 = vld [vmem:[#allocation5 + $0x88] sm:$0xf] }
  0x8f   :  { %1840 = vmatpush.bf16.msrb.mxu0 %v3069_v12  ;;  %v3421_v55 = vor.u32 %v3926_v39, %v3418_v40  ;;  %v2864_v12 = vld [vmem:[#allocation5 + $0x2a8] sm:$0xf]  ;;  %v3821_v15 = vld [vmem:[#allocation5 + $0x3b4] sm:$0xf0]  ;;  %v2737_v17 = vor.u32 %v3757_v11, %v2736_v9 }
  0x90   :  { %v3721_v24 = vld [vmem:[#allocation5 + $0x94] sm:$0xf0]  ;;  %v2720_v25 = vld [vmem:[#allocation5 + $0x188] sm:$0xf] }
  0x91   :  { %1853 = vmatpush.bf16.msrb.mxu1 %v3197_v13  ;;  %1866 = vmatpush.bf16.msrb.mxu2 %v3325_v14  ;;  %v3789_v13 = vld [vmem:[#allocation5 + $0x2b4] sm:$0xf0]  ;;  %v2992_v14 = vld [vmem:[#allocation5 + $0x3a8] sm:$0xf] }
  0x92   :  { %1879 = vmatpush.bf16.msrb.mxu3 %v3453_v21  ;;  %v2865_v21 = vor.u32 %v3789_v13, %v2864_v12  ;;  %v2993_v26 = vor.u32 %v3821_v15, %v2992_v14  ;;  %v3753_v27 = vld [vmem:[#allocation5 + $0x194] sm:$0xf0]  ;;  %v2976_v30 = vld [vmem:[#allocation5 + $0x388] sm:$0xf] }
  0x93   :  { %1841 = vmatpush.bf16.msrb.mxu0 %v3053_v28  ;;  %v2848_v28 = vld [vmem:[#allocation5 + $0x288] sm:$0xf]  ;;  %v3785_v29 = vld [vmem:[#allocation5 + $0x294] sm:$0xf0]  ;;  %v2721_v33 = vor.u32 %v3753_v27, %v2720_v25 }
  0x94   :  { %v2849_v34 = vor.u32 %v3785_v29, %v2848_v28  ;;  %v2576_v35 = vld [vmem:[#allocation5 + $0x68] sm:$0xf]  ;;  %v3749_v40 = vld [vmem:[#allocation5 + $0x174] sm:$0xf0] }
  0x95   :  { %1854 = vmatpush.bf16.msrb.mxu1 %v3181_v31  ;;  %1867 = vmatpush.bf16.msrb.mxu2 %v3309_v32  ;;  %v3817_v31 = vld [vmem:[#allocation5 + $0x394] sm:$0xf0]  ;;  %v2593_v32 = vor.u32 %v3721_v24, %v2592_v23  ;;  %v2704_v37 = vld [vmem:[#allocation5 + $0x168] sm:$0xf] }
  0x96   :  { %1880 = vmatpush.bf16.msrb.mxu3 %v3437_v36  ;;  %v3717_v36 = vld [vmem:[#allocation5 + $0x74] sm:$0xf0]  ;;  %v2977_v39 = vor.u32 %v3817_v31, %v2976_v30  ;;  %v2832_v43 = vld [vmem:[#allocation5 + $0x268] sm:$0xf]  ;;  %v2705_v49 = vor.u32 %v3749_v40, %v2704_v37 }
  0x97   :  { %1842 = vmatpush.bf16.msrb.mxu0 %v3037_v47  ;;  %v3781_v45 = vld [vmem:[#allocation5 + $0x274] sm:$0xf0]  ;;  %v2960_v46 = vld [vmem:[#allocation5 + $0x368] sm:$0xf]  ;;  %v2577_v48 = vor.u32 %v3717_v36, %v2576_v35 }
  0x98   :  { %v3813_v47 = vld [vmem:[#allocation5 + $0x374] sm:$0xf0]  ;;  %v2833_v50 = vor.u32 %v3781_v45, %v2832_v43  ;;  %v2688_v53 = vld [vmem:[#allocation5 + $0x148] sm:$0xf] }
  0x99   :  { %1855 = vmatpush.bf16.msrb.mxu1 %v3165_v51  ;;  %1868 = vmatpush.bf16.msrb.mxu2 %v3293_v52  ;;  %v2560_v51 = vld [vmem:[#allocation5 + $0x48] sm:$0xf]  ;;  %v3713_v52 = vld [vmem:[#allocation5 + $0x54] sm:$0xf0]  ;;  %v2961_v54 = vor.u32 %v3813_v47, %v2960_v46 }
  0x9a   :  { %1881 = vmatpush.bf16.msrb.mxu3 %v3421_v55  ;;  %1843 = vmatmul.bf16.vlgmr.msrb.gmra.mxu0 %v4241_v41  ;;  %v3745_v55 = vld [vmem:[#allocation5 + $0x154] sm:$0xf0]  ;;  %v2561_v60 = vor.u32 %v3713_v52, %v2560_v51  ;;  %v2544_v63 = vld [vmem:[#allocation5 + $0x28] sm:$0xf] }
  0x9b   :  { %1887 = vmatpush.bf16.msra.mxu0 %v2641_v56  ;;  %v2816_v56 = vld [vmem:[#allocation5 + $0x248] sm:$0xf]  ;;  %v3809_v59 = vld [vmem:[#allocation5 + $0x354] sm:$0xf0]  ;;  %v2689_v61 = vor.u32 %v3745_v55, %v2688_v53 }
  0x9c   :  { %1869 = vmatmul.bf16.vlgmr.msrb.gmra.mxu2 %v4239_v38  ;;  %1856 = vmatmul.bf16.vlgmr.msrb.gmra.mxu1 %v4245_v44  ;;  %v3709_v0 = vld [vmem:[#allocation5 + $0x34] sm:$0xf0]  ;;  %v2672_v1 = vld [vmem:[#allocation5 + $0x128] sm:$0xf] }
  0x9d   :  { %1900 = vmatpush.bf16.msra.mxu1 %v2769_v57  ;;  %1913 = vmatpush.bf16.msra.mxu2 %v2897_v58  ;;  %v3777_v57 = vld [vmem:[#allocation5 + $0x254] sm:$0xf0]  ;;  %v2944_v58 = vld [vmem:[#allocation5 + $0x348] sm:$0xf]  ;;  %v2545_v8 = vor.u32 %v3709_v0, %v2544_v63 }
  0x9e   :  { %1926 = vmatpush.bf16.msra.mxu3 %v3025_v62  ;;  %v2817_v62 = vor.u32 %v3777_v57, %v2816_v56  ;;  %v2945_v2 = vor.u32 %v3809_v59, %v2944_v58  ;;  %v3741_v3 = vld [vmem:[#allocation5 + $0x134] sm:$0xf0]  ;;  %v2528_v9 = vld [vmem:[#allocation5 + $0x8] sm:$0xf] }
  0x9f   :  { %1882 = vmatmul.bf16.vlgmr.msrb.gmra.mxu3 %v4243_v42  ;;  %1888 = vmatpush.bf16.msra.mxu0 %v2625_v4  ;;  %v2800_v4 = vld [vmem:[#allocation5 + $0x228] sm:$0xf]  ;;  %v3805_v7 = vld [vmem:[#allocation5 + $0x334] sm:$0xf0]  ;;  %v2673_v11 = vor.u32 %v3741_v3, %v2672_v1 }
  0xa0   :  { %v2656_v13 = vld [vmem:[#allocation5 + $0x108] sm:$0xf]  ;;  %v3737_v14 = vld [vmem:[#allocation5 + $0x114] sm:$0xf0] }
  0xa1   :  { %1901 = vmatpush.bf16.msra.mxu1 %v2753_v5  ;;  %1914 = vmatpush.bf16.msra.mxu2 %v2881_v6  ;;  %v3773_v5 = vld [vmem:[#allocation5 + $0x234] sm:$0xf0]  ;;  %v2928_v6 = vld [vmem:[#allocation5 + $0x328] sm:$0xf]  ;;  %v2657_v31 = vor.u32 %v3737_v14, %v2656_v13 }
  0xa2   :  { %1927 = vmatpush.bf16.msra.mxu3 %v3009_v10  ;;  %v3705_v10 = vld [vmem:[#allocation5 + $0x14] sm:$0xf0]  ;;  %v2801_v12 = vor.u32 %v3773_v5, %v2800_v4  ;;  %v2784_v15 = vld [vmem:[#allocation5 + $0x208] sm:$0xf] }
  0xa3   :  { %1889 = vmatpush.bf16.msra.mxu0 %v2609_v16  ;;  %v2929_v16 = vor.u32 %v3805_v7, %v2928_v6  ;;  %v3801_v23 = vld [vmem:[#allocation5 + $0x314] sm:$0xf0]  ;;  %v3152_v24 = vld [vmem:[#allocation5 + $0x4e8] sm:$0xf]  ;;  %v2529_v27 = vor.u32 %v3705_v10, %v2528_v9 }
  0xa4   :  { %v3861_v25 = vld [vmem:[#allocation5 + $0x4f4] sm:$0xf0]  ;;  %v3408_v29 = vld [vmem:[#allocation5 + $0x6e8] sm:$0xf] }
  0xa5   :  { %1902 = vmatpush.bf16.msra.mxu1 %v2737_v17  ;;  %1915 = vmatpush.bf16.msra.mxu2 %v2865_v21  ;;  %v3769_v17 = vld [vmem:[#allocation5 + $0x214] sm:$0xf0]  ;;  %v2912_v21 = vld [vmem:[#allocation5 + $0x308] sm:$0xf]  ;;  %v3153_v36 = vor.u32 %v3861_v25, %v3152_v24 }
  0xa6   :  { %1928 = vmatpush.bf16.msra.mxu3 %v2993_v26  ;;  %v3280_v26 = vld [vmem:[#allocation5 + $0x5e8] sm:$0xf]  ;;  %v3893_v28 = vld [vmem:[#allocation5 + $0x5f4] sm:$0xf0]  ;;  %v2913_v35 = vor.u32 %v3801_v23, %v2912_v21 }
  0xa7   :  { %1890 = vmatpush.bf16.msra.mxu0 %v2593_v32  ;;  %v3925_v30 = vld [vmem:[#allocation5 + $0x6f4] sm:$0xf0]  ;;  %v2785_v32 = vor.u32 %v3769_v17, %v2784_v15  ;;  %v3281_v37 = vor.u32 %v3893_v28, %v3280_v26  ;;  %v3136_v40 = vld [vmem:[#allocation5 + $0x4c8] sm:$0xf]  ;;  %v4263_v26 = vld [vmem:[#allocation7] sm:$0xf] }
  0xa8   :  { %v3857_v43 = vld [vmem:[#allocation5 + $0x4d4] sm:$0xf0]  ;;  %v3264_v45 = vld [vmem:[#allocation5 + $0x5c8] sm:$0xf] }
  0xa9   :  { %1903 = vmatpush.bf16.msra.mxu1 %v2721_v33  ;;  %1916 = vmatpush.bf16.msra.mxu2 %v2849_v34  ;;  %v3536_v33 = vld [vmem:[#allocation5 + $0x7e8] sm:$0xf]  ;;  %v3957_v34 = vld [vmem:[#allocation5 + $0x7f4] sm:$0xf0]  ;;  %v3137_v52 = vor.u32 %v3857_v43, %v3136_v40 }
  0xaa   :  { %1929 = vmatpush.bf16.msra.mxu3 %v2977_v39  ;;  %v3409_v39 = vor.u32 %v3925_v30, %v3408_v29  ;;  %v3537_v46 = vor.u32 %v3957_v34, %v3536_v33  ;;  %v3889_v47 = vld [vmem:[#allocation5 + $0x5d4] sm:$0xf0]  ;;  %v3120_v55 = vld [vmem:[#allocation5 + $0x4a8] sm:$0xf] }
  0xab   :  { %1891 = vmatpush.bf16.msra.mxu0 %v2577_v48  ;;  %v3392_v48 = vld [vmem:[#allocation5 + $0x6c8] sm:$0xf]  ;;  %v3953_v51 = vld [vmem:[#allocation5 + $0x7d4] sm:$0xf0]  ;;  %v3265_v53 = vor.u32 %v3889_v47, %v3264_v45 }
  0xac   :  { %v3853_v56 = vld [vmem:[#allocation5 + $0x4b4] sm:$0xf0]  ;;  %v3248_v57 = vld [vmem:[#allocation5 + $0x5a8] sm:$0xf] }
  0xad   :  { %1904 = vmatpush.bf16.msra.mxu1 %v2705_v49  ;;  %1917 = vmatpush.bf16.msra.mxu2 %v2833_v50  ;;  %v3921_v49 = vld [vmem:[#allocation5 + $0x6d4] sm:$0xf0]  ;;  %v3520_v50 = vld [vmem:[#allocation5 + $0x7c8] sm:$0xf]  ;;  %v3121_v0 = vor.u32 %v3853_v56, %v3120_v55 }
  0xae   :  { %1930 = vmatpush.bf16.msra.mxu3 %v2961_v54  ;;  %v3393_v54 = vor.u32 %v3921_v49, %v3392_v48  ;;  %v3521_v58 = vor.u32 %v3953_v51, %v3520_v50  ;;  %v3885_v59 = vld [vmem:[#allocation5 + $0x5b4] sm:$0xf0]  ;;  %v3104_v3 = vld [vmem:[#allocation5 + $0x488] sm:$0xf] }
  0xaf   :  { %1892 = vmatpush.bf16.msra.mxu0 %v2561_v60  ;;  %v3376_v60 = vld [vmem:[#allocation5 + $0x6a8] sm:$0xf]  ;;  %v3949_v63 = vld [vmem:[#allocation5 + $0x7b4] sm:$0xf0]  ;;  %v3249_v1 = vor.u32 %v3885_v59, %v3248_v57 }
  0xb0   :  { %v3849_v4 = vld [vmem:[#allocation5 + $0x494] sm:$0xf0]  ;;  %v3232_v5 = vld [vmem:[#allocation5 + $0x588] sm:$0xf] }
  0xb1   :  { %1905 = vmatpush.bf16.msra.mxu1 %v2689_v61  ;;  %1918 = vmatpush.bf16.msra.mxu2 %v2817_v62  ;;  %v3917_v61 = vld [vmem:[#allocation5 + $0x6b4] sm:$0xf0]  ;;  %v3504_v62 = vld [vmem:[#allocation5 + $0x7a8] sm:$0xf] }
  0xb2   :  { %1931 = vmatpush.bf16.msra.mxu3 %v2945_v2  ;;  %v3377_v2 = vor.u32 %v3917_v61, %v3376_v60  ;;  %v3505_v6 = vor.u32 %v3949_v63, %v3504_v62  ;;  %v3881_v7 = vld [vmem:[#allocation5 + $0x594] sm:$0xf0]  ;;  %v3488_v10 = vld [vmem:[#allocation5 + $0x788] sm:$0xf] }
  0xb3   :  { %1893 = vmatpush.bf16.msra.mxu0 %v2545_v8  ;;  %v3360_v8 = vld [vmem:[#allocation5 + $0x688] sm:$0xf]  ;;  %v3913_v9 = vld [vmem:[#allocation5 + $0x694] sm:$0xf0]  ;;  %v3233_v14 = vor.u32 %v3881_v7, %v3232_v5 }
  0xb4   :  { %v3088_v13 = vld [vmem:[#allocation5 + $0x468] sm:$0xf]  ;;  %v3361_v15 = vor.u32 %v3913_v9, %v3360_v8  ;;  %v3877_v21 = vld [vmem:[#allocation5 + $0x574] sm:$0xf0] }
  0xb5   :  { %1906 = vmatpush.bf16.msra.mxu1 %v2673_v11  ;;  %1919 = vmatpush.bf16.msra.mxu2 %v2801_v12  ;;  %v3945_v11 = vld [vmem:[#allocation5 + $0x794] sm:$0xf0]  ;;  %v3105_v12 = vor.u32 %v3849_v4, %v3104_v3  ;;  %v3216_v17 = vld [vmem:[#allocation5 + $0x568] sm:$0xf] }
  0xb6   :  { %1932 = vmatpush.bf16.msra.mxu3 %v2929_v16  ;;  %v3845_v16 = vld [vmem:[#allocation5 + $0x474] sm:$0xf0]  ;;  %v3489_v23 = vor.u32 %v3945_v11, %v3488_v10  ;;  %v3344_v24 = vld [vmem:[#allocation5 + $0x668] sm:$0xf] }
  0xb7   :  { %1894 = vmatpush.bf16.msra.mxu0 %v2529_v27  ;;  %v3909_v25 = vld [vmem:[#allocation5 + $0x674] sm:$0xf0]  ;;  %v3472_v27 = vld [vmem:[#allocation5 + $0x768] sm:$0xf]  ;;  %v3089_v29 = vor.u32 %v3845_v16, %v3088_v13  ;;  %v3731_v13 = vld [vmem:[#allocation5 + $0xec] sm:$0xf] }
  0xb8   :  { %v3941_v28 = vld [vmem:[#allocation5 + $0x774] sm:$0xf0]  ;;  %v3072_v30 = vld [vmem:[#allocation5 + $0x448] sm:$0xf] }
  0xb9   :  { %1907 = vmatpush.bf16.msra.mxu1 %v2657_v31  ;;  %1920 = vmatpush.bf16.msra.mxu2 %v2785_v32  ;;  %v3217_v31 = vor.u32 %v3877_v21, %v3216_v17  ;;  %v3345_v32 = vor.u32 %v3909_v25, %v3344_v24  ;;  %v3841_v33 = vld [vmem:[#allocation5 + $0x454] sm:$0xf0]  ;;  %v3200_v34 = vld [vmem:[#allocation5 + $0x548] sm:$0xf]  ;;  %v2770_v17 = vld [vmem:[#allocation5 + $0x1f8] sm:$0xf0] }
  0xba   :  { %1933 = vmatpush.bf16.msra.mxu3 %v2913_v35  ;;  %1895 = vmatmul.bf16.vlgmr.msra.gmra.mxu0 %v4229_v19  ;;  %v363_v35 = vperm.slane %v4263_v26, 0  ;;  %v3905_v40 = vld [vmem:[#allocation5 + $0x654] sm:$0xf0]  ;;  %v3456_v43 = vld [vmem:[#allocation5 + $0x748] sm:$0xf] }
  0xbb   :  { %1939 = vmatpush.bf16.msrb.mxu0 %v3153_v36  ;;  %v3473_v36 = vor.u32 %v3941_v28, %v3472_v27  ;;  %v3937_v45 = vld [vmem:[#allocation5 + $0x754] sm:$0xf0]  ;;  %v3056_v50 = vld [vmem:[#allocation5 + $0x428] sm:$0xf]  ;;  %v3795_v21 = vld [vmem:[#allocation5 + $0x2ec] sm:$0xf] }
  0xbc   :  { %1921 = vmatmul.bf16.vlgmr.msra.gmra.mxu2 %v4227_v18  ;;  %1908 = vmatmul.bf16.vlgmr.msra.gmra.mxu1 %v4233_v22  ;;  %v3837_v51 = vld [vmem:[#allocation5 + $0x434] sm:$0xf0]  ;;  %v3457_v55 = vor.u32 %v3937_v45, %v3456_v43  ;;  %v3312_v57 = vld [vmem:[#allocation5 + $0x628] sm:$0xf]  ;;  %v2754_v43 = vld [vmem:[#allocation5 + $0x1d8] sm:$0xf0] }
  0xbd   :  { %1952 = vmatpush.bf16.msrb.mxu1 %v3281_v37  ;;  %1965 = vmatpush.bf16.msrb.mxu2 %v3409_v39  ;;  %v3873_v37 = vld [vmem:[#allocation5 + $0x554] sm:$0xf0]  ;;  %v3328_v39 = vld [vmem:[#allocation5 + $0x648] sm:$0xf]  ;;  %v3057_v62 = vor.u32 %v3837_v51, %v3056_v50  ;;  %v3791_v45 = vld [vmem:[#allocation5 + $0x2cc] sm:$0xf] }
  0xbe   :  { %1978 = vmatpush.bf16.msrb.mxu3 %v3537_v46  ;;  %v3073_v46 = vor.u32 %v3841_v33, %v3072_v30  ;;  %v3201_v48 = vor.u32 %v3873_v37, %v3200_v34  ;;  %v3329_v49 = vor.u32 %v3905_v40, %v3328_v39  ;;  %v3869_v56 = vld [vmem:[#allocation5 + $0x534] sm:$0xf0]  ;;  %v3440_v59 = vld [vmem:[#allocation5 + $0x728] sm:$0xf]  ;;  %v3026_v30 = vld [vmem:[#allocation5 + $0x3f8] sm:$0xf0] }
  0xbf   :  { %1934 = vmatmul.bf16.vlgmr.msra.gmra.mxu3 %v4231_v20  ;;  %1940 = vmatpush.bf16.msrb.mxu0 %v3137_v52  ;;  %v3184_v52 = vld [vmem:[#allocation5 + $0x528] sm:$0xf]  ;;  %v3933_v60 = vld [vmem:[#allocation5 + $0x734] sm:$0xf0]  ;;  %v2626_v37 = vld [vmem:[#allocation5 + $0xd8] sm:$0xf0] }
  0xc0   :  { %v3040_v63 = vld [vmem:[#allocation5 + $0x408] sm:$0xf]  ;;  %v3865_v4 = vld [vmem:[#allocation5 + $0x514] sm:$0xf0]  ;;  %v3441_v7 = vor.u32 %v3933_v60, %v3440_v59  ;;  %v3759_v39 = vld [vmem:[#allocation5 + $0x1cc] sm:$0xf] }
  0xc1   :  { %1953 = vmatpush.bf16.msrb.mxu1 %v3265_v53  ;;  %1966 = vmatpush.bf16.msrb.mxu2 %v3393_v54  ;;  %v3168_v3 = vld [vmem:[#allocation5 + $0x508] sm:$0xf]  ;;  %v3897_v8 = vld [vmem:[#allocation5 + $0x614] sm:$0xf0]  ;;  %v3787_v59 = vld [vmem:[#allocation5 + $0x2ac] sm:$0xf] }
  0xc2   :  { %1979 = vmatpush.bf16.msrb.mxu3 %v3521_v58  ;;  %v3901_v58 = vld [vmem:[#allocation5 + $0x634] sm:$0xf0]  ;;  %v3296_v5 = vld [vmem:[#allocation5 + $0x608] sm:$0xf]  ;;  %v3169_v27 = vor.u32 %v3865_v4, %v3168_v3  ;;  %v2866_v60 = vld [vmem:[#allocation5 + $0x2b8] sm:$0xf0] }
  0xc3   :  { %1941 = vmatpush.bf16.msrb.mxu0 %v3121_v0  ;;  %v3833_v0 = vld [vmem:[#allocation5 + $0x414] sm:$0xf0]  ;;  %v3424_v9 = vld [vmem:[#allocation5 + $0x708] sm:$0xf]  ;;  %v3297_v28 = vor.u32 %v3897_v8, %v3296_v5  ;;  %v2594_v3 = vld [vmem:[#allocation5 + $0x98] sm:$0xf0] }
  0xc4   :  { %v3929_v10 = vld [vmem:[#allocation5 + $0x714] sm:$0xf0]  ;;  %v3041_v16 = vor.u32 %v3833_v0, %v3040_v63  ;;  %v3751_v4 = vld [vmem:[#allocation5 + $0x18c] sm:$0xf]  ;;  %v2850_v8 = vld [vmem:[#allocation5 + $0x298] sm:$0xf0] }
  0xc5   :  { %1954 = vmatpush.bf16.msrb.mxu1 %v3249_v1  ;;  %1967 = vmatpush.bf16.msrb.mxu2 %v3377_v2  ;;  %v1688_v47 = vpop.f32.mrf.mxu0  ;;  %v1701_v54 = vpop.f32.mrf.mxu1  ;;  %v3185_v1 = vor.u32 %v3869_v56, %v3184_v52  ;;  %v3313_v2 = vor.u32 %v3901_v58, %v3312_v57  ;;  %v2757_v52 = vor.u32 %v3759_v39, %v2754_v43  ;;  %v3755_v56 = vld [vmem:[#allocation5 + $0x1ac] sm:$0xf]  ;;  %v2738_v58 = vld [vmem:[#allocation5 + $0x1b8] sm:$0xf0] }
  0xc6   :  { %1980 = vmatpush.bf16.msrb.mxu3 %v3505_v6  ;;  %v1689_v53 = vadd.f32 %v1688_v47, %v363_v35  ;;  %v1714_v6 = vpop.f32.mrf.mxu2  ;;  %v3823_v47 = vld [vmem:[#allocation5 + $0x3cc] sm:$0xf]  ;;  %v2741_v0 = vor.u32 %v3755_v56, %v2738_v58  ;;  %v2690_v43 = vld [vmem:[#allocation5 + $0x158] sm:$0xf0] }
  0xc7   :  { %1942 = vmatpush.bf16.msrb.mxu0 %v3105_v12  ;;  %v1727_v12 = vpop.f32.mrf.mxu3  ;;  %v3743_v39 = vld [vmem:[#allocation5 + $0x14c] sm:$0xf] }
  0xc8   :  { %v1702_v61 = vadd.f32 %v1701_v54, %v1689_v53  ;;  %v3723_v54 = vld [vmem:[#allocation5 + $0xac] sm:$0xf] }
  0xc9   :  { %1955 = vmatpush.bf16.msrb.mxu1 %v3233_v14  ;;  %1968 = vmatpush.bf16.msrb.mxu2 %v3361_v15  ;;  %v2642_v14 = vld [vmem:[#allocation5 + $0xf8] sm:$0xf0]  ;;  %v3763_v15 = vld [vmem:[#allocation5 + $0x1ec] sm:$0xf] }
  0xca   :  { %1981 = vmatpush.bf16.msrb.mxu3 %v3489_v23  ;;  %v1715_v11 = vadd.f32 %v1714_v6, %v1702_v61  ;;  %v2898_v23 = vld [vmem:[#allocation5 + $0x2f8] sm:$0xf0]  ;;  %v2645_v33 = vor.u32 %v3731_v13, %v2642_v14  ;;  %v2773_v34 = vor.u32 %v3763_v15, %v2770_v17  ;;  %v3819_v61 = vld [vmem:[#allocation5 + $0x3ac] sm:$0xf] }
  0xcb   :  { %1943 = vmatpush.bf16.msrb.mxu0 %v3089_v29  ;;  %v3827_v29 = vld [vmem:[#allocation5 + $0x3ec] sm:$0xf]  ;;  %v2901_v35 = vor.u32 %v3795_v21, %v2898_v23  ;;  %v2722_v6 = vld [vmem:[#allocation5 + $0x198] sm:$0xf0] }
  0xcc   :  { %v4266_v24 = vadd.f32 %v1727_v12, %v1715_v11  ;;  %v3029_v40 = vor.u32 %v3827_v29, %v3026_v30  ;;  %v2725_v13 = vor.u32 %v3751_v4, %v2722_v6  ;;  %v3715_v15 = vld [vmem:[#allocation5 + $0x6c] sm:$0xf]  ;;  %v2834_v29 = vld [vmem:[#allocation5 + $0x278] sm:$0xf0] }
  0xcd   :  { %1956 = vmatpush.bf16.msrb.mxu1 %v3217_v31  ;;  %1969 = vmatpush.bf16.msrb.mxu2 %v3345_v32  ;;  %v1690_v25 = vpop.f32.mrf.mxu0  ;;  %v1703_v31 = vpop.f32.mrf.mxu1  ;;  %v3425_v32 = vor.u32 %v3929_v10, %v3424_v9  ;;  %v3815_v9 = vld [vmem:[#allocation5 + $0x38c] sm:$0xf]  ;;  %v2978_v10 = vld [vmem:[#allocation5 + $0x398] sm:$0xf0] }
  0xce   :  { %1982 = vmatpush.bf16.msrb.mxu3 %v3473_v36  ;;  %v3727_v36 = vld [vmem:[#allocation5 + $0xcc] sm:$0xf]  ;;  %v2981_v25 = vor.u32 %v3815_v9, %v2978_v10  ;;  %v2962_v31 = vld [vmem:[#allocation5 + $0x378] sm:$0xf0] }
  0xcf   :  { %1944 = vmatpush.bf16.msrb.mxu0 %v3073_v46  ;;  %v2882_v46 = vld [vmem:[#allocation5 + $0x2d8] sm:$0xf0]  ;;  %v2629_v50 = vor.u32 %v3727_v36, %v2626_v37  ;;  %v1729_v51 = vpop.f32.mrf.mxu3  ;;  %v3747_v17 = vld [vmem:[#allocation5 + $0x16c] sm:$0xf] }
  0xd0   :  { %v2885_v53 = vor.u32 %v3791_v45, %v2882_v46  ;;  %v3811_v30 = vld [vmem:[#allocation5 + $0x36c] sm:$0xf]  ;;  %v2562_v37 = vld [vmem:[#allocation5 + $0x58] sm:$0xf0] }
  0xd1   :  { %1957 = vmatpush.bf16.msrb.mxu1 %v3201_v48  ;;  %1970 = vmatpush.bf16.msrb.mxu2 %v3329_v49  ;;  %v3010_v48 = vld [vmem:[#allocation5 + $0x3d8] sm:$0xf0]  ;;  %v1716_v49 = vpop.f32.mrf.mxu2  ;;  %v3711_v36 = vld [vmem:[#allocation5 + $0x4c] sm:$0xf] }
  0xd2   :  { %1983 = vmatpush.bf16.msrb.mxu3 %v3457_v55  ;;  %v2610_v55 = vld [vmem:[#allocation5 + $0xb8] sm:$0xf0]  ;;  %v3013_v57 = vor.u32 %v3823_v47, %v3010_v48  ;;  %v3775_v45 = vld [vmem:[#allocation5 + $0x24c] sm:$0xf]  ;;  %v2565_v51 = vor.u32 %v3711_v36, %v2562_v37 }
  0xd3   :  { %1945 = vmatpush.bf16.msrb.mxu0 %v3057_v62  ;;  %v2994_v62 = vld [vmem:[#allocation5 + $0x3b8] sm:$0xf0]  ;;  %v2613_v63 = vor.u32 %v3723_v54, %v2610_v55  ;;  %v3807_v49 = vld [vmem:[#allocation5 + $0x34c] sm:$0xf]  ;;  %v2693_v54 = vor.u32 %v3743_v39, %v2690_v43 }
  0xd4   :  { %v2997_v5 = vor.u32 %v3819_v61, %v2994_v62  ;;  %v2818_v46 = vld [vmem:[#allocation5 + $0x258] sm:$0xf0]  ;;  %v3707_v56 = vld [vmem:[#allocation5 + $0x2c] sm:$0xf] }
  0xd5   :  { %1958 = vmatpush.bf16.msrb.mxu1 %v3185_v1  ;;  %1971 = vmatpush.bf16.msrb.mxu2 %v3313_v2  ;;  %v2869_v1 = vor.u32 %v3787_v59, %v2866_v60  ;;  %v3719_v2 = vld [vmem:[#allocation5 + $0x8c] sm:$0xf]  ;;  %v2821_v55 = vor.u32 %v3775_v45, %v2818_v46  ;;  %v2674_v61 = vld [vmem:[#allocation5 + $0x138] sm:$0xf0] }
  0xd6   :  { %1984 = vmatpush.bf16.msrb.mxu3 %v3441_v7  ;;  %v3783_v7 = vld [vmem:[#allocation5 + $0x28c] sm:$0xf]  ;;  %v2597_v11 = vor.u32 %v3719_v2, %v2594_v3  ;;  %v2530_v4 = vld [vmem:[#allocation5 + $0x18] sm:$0xf0] }
  0xd7   :  { %1946 = vmatpush.bf16.msrb.mxu0 %v3041_v16  ;;  %v2853_v14 = vor.u32 %v3783_v7, %v2850_v8  ;;  %v2578_v16 = vld [vmem:[#allocation5 + $0x78] sm:$0xf0]  ;;  %v3739_v58 = vld [vmem:[#allocation5 + $0x12c] sm:$0xf] }
  0xd8   :  { %v3771_v62 = vld [vmem:[#allocation5 + $0x22c] sm:$0xf]  ;;  %v2658_v8 = vld [vmem:[#allocation5 + $0x118] sm:$0xf0] }
  0xd9   :  { %1959 = vmatpush.bf16.msrb.mxu1 %v3169_v27  ;;  %1972 = vmatpush.bf16.msrb.mxu2 %v3297_v28  ;;  %v1740_v12 = vpop.f32.mrf.mxu0  ;;  %v2706_v27 = vld [vmem:[#allocation5 + $0x178] sm:$0xf0]  ;;  %v3779_v28 = vld [vmem:[#allocation5 + $0x26c] sm:$0xf] }
  0xda   :  { %1985 = vmatpush.bf16.msrb.mxu3 %v3425_v32  ;;  %1947 = vmatmul.bf16.vlgmr.msrb.gmra.mxu0 %v4241_v41  ;;  %v1741_v21 = vadd.f32 %v1740_v12, %v4266_v24  ;;  %v2965_v24 = vor.u32 %v3811_v30, %v2962_v31  ;;  %v3703_v3 = vld [vmem:[#allocation5 + $0xc] sm:$0xf]  ;;  %v2786_v12 = vld [vmem:[#allocation5 + $0x218] sm:$0xf0] }
  0xdb   :  { %1991 = vmatpush.bf16.msra.mxu0 %v2645_v33  ;;  %v1753_v23 = vpop.f32.mrf.mxu1  ;;  %v2581_v33 = vor.u32 %v3715_v15, %v2578_v16  ;;  %v3735_v7 = vld [vmem:[#allocation5 + $0x10c] sm:$0xf]  ;;  %v3138_v39 = vld [vmem:[#allocation5 + $0x4d8] sm:$0xf0] }
  0xdc   :  { %1973 = vmatmul.bf16.vlgmr.msrb.gmra.mxu2 %v4239_v38  ;;  %1960 = vmatmul.bf16.vlgmr.msrb.gmra.mxu1 %v4245_v44  ;;  %v1754_v32 = vadd.f32 %v1753_v23, %v1741_v21  ;;  %v3767_v9 = vld [vmem:[#allocation5 + $0x20c] sm:$0xf]  ;;  %v2533_v23 = vor.u32 %v3703_v3, %v2530_v4  ;;  %v3266_v43 = vld [vmem:[#allocation5 + $0x5d8] sm:$0xf0] }
  0xdd   :  { %2004 = vmatpush.bf16.msra.mxu1 %v2773_v34  ;;  %2017 = vmatpush.bf16.msra.mxu2 %v2901_v35  ;;  %v2709_v34 = vor.u32 %v3747_v17, %v2706_v27  ;;  %v2837_v35 = vor.u32 %v3779_v28, %v2834_v29  ;;  %v3859_v16 = vld [vmem:[#allocation5 + $0x4ec] sm:$0xf]  ;;  %v3154_v17 = vld [vmem:[#allocation5 + $0x4f8] sm:$0xf0]  ;;  %v2661_v29 = vor.u32 %v3735_v7, %v2658_v8 }
  0xde   :  { %2030 = vmatpush.bf16.msra.mxu3 %v3029_v40  ;;  %v3891_v21 = vld [vmem:[#allocation5 + $0x5ec] sm:$0xf]  ;;  %v3410_v28 = vld [vmem:[#allocation5 + $0x6f8] sm:$0xf0]  ;;  %v2789_v30 = vor.u32 %v3767_v9, %v2786_v12 }
  0xdf   :  { %1986 = vmatmul.bf16.vlgmr.msrb.gmra.mxu3 %v4243_v42  ;;  %1992 = vmatpush.bf16.msra.mxu0 %v2629_v50  ;;  %v1766_v40 = vpop.f32.mrf.mxu2  ;;  %v2946_v50 = vld [vmem:[#allocation5 + $0x358] sm:$0xf0]  ;;  %v3923_v27 = vld [vmem:[#allocation5 + $0x6ec] sm:$0xf] }
  0xe0   :  { %v1767_v47 = vadd.f32 %v1766_v40, %v1754_v32  ;;  %v2949_v60 = vor.u32 %v3807_v49, %v2946_v50  ;;  %v3955_v31 = vld [vmem:[#allocation5 + $0x7ec] sm:$0xf]  ;;  %v3538_v32 = vld [vmem:[#allocation5 + $0x7f8] sm:$0xf0]  ;;  %v3413_v36 = vor.u32 %v3923_v27, %v3410_v28 }
  0xe1   :  { %2005 = vmatpush.bf16.msra.mxu1 %v2757_v52  ;;  %2018 = vmatpush.bf16.msra.mxu2 %v2885_v53  ;;  %v1742_v53 = vpop.f32.mrf.mxu0  ;;  %v3855_v37 = vld [vmem:[#allocation5 + $0x4cc] sm:$0xf]  ;;  %v3394_v46 = vld [vmem:[#allocation5 + $0x6d8] sm:$0xf0] }
  0xe2   :  { %2031 = vmatpush.bf16.msra.mxu3 %v3013_v57  ;;  %v1779_v48 = vpop.f32.mrf.mxu3  ;;  %v2546_v57 = vld [vmem:[#allocation5 + $0x38] sm:$0xf0]  ;;  %v3887_v40 = vld [vmem:[#allocation5 + $0x5cc] sm:$0xf]  ;;  %v3141_v49 = vor.u32 %v3855_v37, %v3138_v39 }
  0xe3   :  { %1993 = vmatpush.bf16.msra.mxu0 %v2613_v63  ;;  %v4273_v52 = vadd.f32 %v1779_v48, %v1767_v47  ;;  %v1755_v59 = vpop.f32.mrf.mxu1  ;;  %v2802_v63 = vld [vmem:[#allocation5 + $0x238] sm:$0xf0]  ;;  %v2549_v2 = vor.u32 %v3707_v56, %v2546_v57  ;;  %v3919_v45 = vld [vmem:[#allocation5 + $0x6cc] sm:$0xf]  ;;  %v3269_v50 = vor.u32 %v3887_v40, %v3266_v43 }
  0xe4   :  { %v2805_v6 = vor.u32 %v3771_v62, %v2802_v63  ;;  %v3951_v47 = vld [vmem:[#allocation5 + $0x7cc] sm:$0xf]  ;;  %v3522_v48 = vld [vmem:[#allocation5 + $0x7d8] sm:$0xf0] }
  0xe5   :  { %2006 = vmatpush.bf16.msra.mxu1 %v2741_v0  ;;  %2019 = vmatpush.bf16.msra.mxu2 %v2869_v1  ;;  %v3803_v0 = vld [vmem:[#allocation5 + $0x32c] sm:$0xf]  ;;  %v2930_v1 = vld [vmem:[#allocation5 + $0x338] sm:$0xf0]  ;;  %v3525_v56 = vor.u32 %v3951_v47, %v3522_v48 }
  0xe6   :  { %2032 = vmatpush.bf16.msra.mxu3 %v2997_v5  ;;  %v2677_v5 = vor.u32 %v3739_v58, %v2674_v61  ;;  %v3851_v53 = vld [vmem:[#allocation5 + $0x4ac] sm:$0xf]  ;;  %v3250_v57 = vld [vmem:[#allocation5 + $0x5b8] sm:$0xf0] }
  0xe7   :  { %1994 = vmatpush.bf16.msra.mxu0 %v2597_v11  ;;  %v1768_v10 = vpop.f32.mrf.mxu2  ;;  %v2933_v11 = vor.u32 %v3803_v0, %v2930_v1  ;;  %v3915_v58 = vld [vmem:[#allocation5 + $0x6ac] sm:$0xf]  ;;  %v3378_v59 = vld [vmem:[#allocation5 + $0x6b8] sm:$0xf0] }
  0xe8   :  { %v3506_v61 = vld [vmem:[#allocation5 + $0x7b8] sm:$0xf0]  ;;  %v3381_v0 = vor.u32 %v3915_v58, %v3378_v59  ;;  %v3847_v1 = vld [vmem:[#allocation5 + $0x48c] sm:$0xf]  ;;  %v364_v58 = vperm.slane %v4263_v26, 1 }
  0xe9   :  { %2007 = vmatpush.bf16.msra.mxu1 %v2725_v13  ;;  %2020 = vmatpush.bf16.msra.mxu2 %v2853_v14  ;;  %v3799_v13 = vld [vmem:[#allocation5 + $0x30c] sm:$0xf]  ;;  %v2914_v14 = vld [vmem:[#allocation5 + $0x318] sm:$0xf0] }
  0xea   :  { %2033 = vmatpush.bf16.msra.mxu3 %v2981_v25  ;;  %v1781_v15 = vpop.f32.mrf.mxu3  ;;  %v3282_v25 = vld [vmem:[#allocation5 + $0x5f8] sm:$0xf0]  ;;  %v3943_v7 = vld [vmem:[#allocation5 + $0x78c] sm:$0xf] }
  0xeb   :  { %1995 = vmatpush.bf16.msra.mxu0 %v2581_v33  ;;  %v2917_v33 = vor.u32 %v3799_v13, %v2914_v14  ;;  %v3234_v4 = vld [vmem:[#allocation5 + $0x598] sm:$0xf0]  ;;  %v3843_v10 = vld [vmem:[#allocation5 + $0x46c] sm:$0xf] }
  0xec   :  { %v3875_v12 = vld [vmem:[#allocation5 + $0x56c] sm:$0xf]  ;;  %v3218_v15 = vld [vmem:[#allocation5 + $0x578] sm:$0xf0] }
  0xed   :  { %2008 = vmatpush.bf16.msra.mxu1 %v2709_v34  ;;  %2021 = vmatpush.bf16.msra.mxu2 %v2837_v35  ;;  %v3157_v34 = vor.u32 %v3859_v16, %v3154_v17  ;;  %v3285_v35 = vor.u32 %v3891_v21, %v3282_v25  ;;  %v3907_v16 = vld [vmem:[#allocation5 + $0x66c] sm:$0xf]  ;;  %v3346_v17 = vld [vmem:[#allocation5 + $0x678] sm:$0xf0]  ;;  %v3221_v27 = vor.u32 %v3875_v12, %v3218_v15  ;;  %v3964_v15 = vld [vmem:[#allocation8 + $0x30] sm:$0xff] }
  0xee   :  { %2034 = vmatpush.bf16.msra.mxu3 %v2965_v24  ;;  %v3541_v24 = vor.u32 %v3955_v31, %v3538_v32  ;;  %v3939_v21 = vld [vmem:[#allocation5 + $0x76c] sm:$0xf]  ;;  %v3349_v28 = vor.u32 %v3907_v16, %v3346_v17  ;;  %v3458_v40 = vld [vmem:[#allocation5 + $0x758] sm:$0xf0] }
  0xef   :  { %1996 = vmatpush.bf16.msra.mxu0 %v2565_v51  ;;  %v3397_v51 = vor.u32 %v3919_v45, %v3394_v46  ;;  %v3871_v31 = vld [vmem:[#allocation5 + $0x54c] sm:$0xf]  ;;  %v3058_v48 = vld [vmem:[#allocation5 + $0x438] sm:$0xf0] }
  0xf0   :  { %v3935_v39 = vld [vmem:[#allocation5 + $0x74c] sm:$0xf]  ;;  %v3973_v12 = vld [vmem:[#allocation8 + $0x78] sm:$0xff] }
  0xf1   :  { %2009 = vmatpush.bf16.msra.mxu1 %v2693_v54  ;;  %2022 = vmatpush.bf16.msra.mxu2 %v2821_v55  ;;  %v3122_v54 = vld [vmem:[#allocation5 + $0x4b8] sm:$0xf0]  ;;  %v3883_v55 = vld [vmem:[#allocation5 + $0x5ac] sm:$0xf] }
  0xf2   :  { %2035 = vmatpush.bf16.msra.mxu3 %v2949_v60  ;;  %v3947_v60 = vld [vmem:[#allocation5 + $0x7ac] sm:$0xf]  ;;  %v3125_v62 = vor.u32 %v3851_v53, %v3122_v54  ;;  %v3253_v63 = vor.u32 %v3883_v55, %v3250_v57  ;;  %v3186_v53 = vld [vmem:[#allocation5 + $0x538] sm:$0xf0] }
  0xf3   :  { %1997 = vmatpush.bf16.msra.mxu0 %v2549_v2  ;;  %v3106_v2 = vld [vmem:[#allocation5 + $0x498] sm:$0xf0]  ;;  %v3509_v3 = vor.u32 %v3947_v60, %v3506_v61  ;;  %v3835_v47 = vld [vmem:[#allocation5 + $0x42c] sm:$0xf] }
  0xf4   :  { %v3899_v54 = vld [vmem:[#allocation5 + $0x62c] sm:$0xf]  ;;  %v3314_v55 = vld [vmem:[#allocation5 + $0x638] sm:$0xf0]  ;;  %v3061_v59 = vor.u32 %v3835_v47, %v3058_v48 }
  0xf5   :  { %2010 = vmatpush.bf16.msra.mxu1 %v2677_v5  ;;  %2023 = vmatpush.bf16.msra.mxu2 %v2805_v6  ;;  %v3911_v5 = vld [vmem:[#allocation5 + $0x68c] sm:$0xf]  ;;  %v3362_v6 = vld [vmem:[#allocation5 + $0x698] sm:$0xf0]  ;;  %v3317_v61 = vor.u32 %v3899_v54, %v3314_v55 }
  0xf6   :  { %2036 = vmatpush.bf16.msra.mxu3 %v2933_v11  ;;  %v3365_v9 = vor.u32 %v3911_v5, %v3362_v6  ;;  %v3090_v11 = vld [vmem:[#allocation5 + $0x478] sm:$0xf0]  ;;  %v3927_v6 = vld [vmem:[#allocation5 + $0x70c] sm:$0xf] }
  0xf7   :  { %1998 = vmatpush.bf16.msra.mxu0 %v2533_v23  ;;  %v4279_v8 = vpop.f32.mrf.mxu0  ;;  %v3474_v23 = vld [vmem:[#allocation5 + $0x778] sm:$0xf0]  ;;  %v3093_v25 = vor.u32 %v3843_v10, %v3090_v11 }
  0xf8   :  { %v3442_v57 = vld [vmem:[#allocation5 + $0x738] sm:$0xf0] }
  0xf9   :  { %2011 = vmatpush.bf16.msra.mxu1 %v2661_v29  ;;  %2024 = vmatpush.bf16.msra.mxu2 %v2789_v30  ;;  %v4281_v13 = vpop.f32.mrf.mxu1  ;;  %v3839_v29 = vld [vmem:[#allocation5 + $0x44c] sm:$0xf]  ;;  %v3074_v30 = vld [vmem:[#allocation5 + $0x458] sm:$0xf0] }
  0xfa   :  { %2037 = vmatpush.bf16.msra.mxu3 %v2917_v33  ;;  %1999 = vmatmul.bf16.vlgmr.msra.gmra.mxu0 %v4229_v19  ;;  %v3490_v19 = vld [vmem:[#allocation5 + $0x798] sm:$0xf0]  ;;  %v3477_v33 = vor.u32 %v3939_v21, %v3474_v23  ;;  %v3971_v23 = vld [vmem:[#allocation8 + $0x68] sm:$0xff] }
  0xfb   :  { %2043 = vmatpush.bf16.msrb.mxu0 %v3157_v34  ;;  %v3493_v14 = vor.u32 %v3943_v7, %v3490_v19  ;;  %v3202_v34 = vld [vmem:[#allocation5 + $0x558] sm:$0xf0]  ;;  %v1793_v19 = vadd.f32 %v4279_v8, %v364_v58  ;;  %v3972_v8 = vld [vmem:[#allocation8 + $0x70] sm:$0xff] }
  0xfc   :  { %2025 = vmatmul.bf16.vlgmr.msra.gmra.mxu2 %v4227_v18  ;;  %2012 = vmatmul.bf16.vlgmr.msra.gmra.mxu1 %v4233_v22  ;;  %v3879_v18 = vld [vmem:[#allocation5 + $0x58c] sm:$0xf]  ;;  %v3205_v45 = vor.u32 %v3871_v31, %v3202_v34  ;;  %v3426_v7 = vld [vmem:[#allocation5 + $0x718] sm:$0xf0]  ;;  %v3960_v34 = vld [vmem:[#allocation8 + $0x10] sm:$0xff] }
  0xfd   :  { %2056 = vmatpush.bf16.msrb.mxu1 %v3285_v35  ;;  %2069 = vmatpush.bf16.msrb.mxu2 %v3413_v36  ;;  %v3237_v22 = vor.u32 %v3879_v18, %v3234_v4  ;;  %v3903_v35 = vld [vmem:[#allocation5 + $0x64c] sm:$0xf]  ;;  %v3330_v36 = vld [vmem:[#allocation5 + $0x658] sm:$0xf0]  ;;  %v3429_v10 = vor.u32 %v3927_v6, %v3426_v7  ;;  %v3976_v58 = vld [vmem:[#allocation8 + $0x90] sm:$0xff] }
  0xfe   :  { %2082 = vmatpush.bf16.msrb.mxu3 %v3541_v24  ;;  %v3077_v24 = vor.u32 %v3839_v29, %v3074_v30  ;;  %v3333_v46 = vor.u32 %v3903_v35, %v3330_v36  ;;  %v3170_v18 = vld [vmem:[#allocation5 + $0x518] sm:$0xf0]  ;;  %v3980_v30 = vld [vmem:[#allocation8 + $0xb0] sm:$0xff] }
  0xff   :  { %2038 = vmatmul.bf16.vlgmr.msra.gmra.mxu3 %v4231_v20  ;;  %2044 = vmatpush.bf16.msrb.mxu0 %v3141_v49  ;;  %v3109_v20 = vor.u32 %v3847_v1, %v3106_v2  ;;  %v4283_v32 = vpop.f32.mrf.mxu2  ;;  %v1794_v43 = vpop.f32.mrf.mxu0  ;;  %v3867_v49 = vld [vmem:[#allocation5 + $0x52c] sm:$0xf]  ;;  %v3298_v4 = vld [vmem:[#allocation5 + $0x618] sm:$0xf0] }
 0x100   :  { %v3189_v60 = vor.u32 %v3867_v49, %v3186_v53  ;;  %v3965_v11 = vld [vmem:[#allocation8 + $0x38] sm:$0xff]  ;;  %v3959_v43 = vld [vmem:[#allocation8 + $0x8] sm:$0xff]  ;;  %v3966_v53 = vld [vmem:[#allocation8 + $0x40] sm:$0xff] }
 0x101   :  { %2057 = vmatpush.bf16.msrb.mxu1 %v3269_v50  ;;  %2070 = vmatpush.bf16.msrb.mxu2 %v3397_v51  ;;  %v1807_v50 = vpop.f32.mrf.mxu1  ;;  %v3461_v51 = vor.u32 %v3935_v39, %v3458_v40  ;;  %v3981_v16 = vld [vmem:[#allocation8 + $0xb8] sm:$0xff]  ;;  %v3968_v39 = vld [vmem:[#allocation8 + $0x50] sm:$0xff] }
 0x102   :  { %2083 = vmatpush.bf16.msrb.mxu3 %v3525_v56  ;;  %v4285_v37 = vpop.f32.mrf.mxu3  ;;  %v3931_v56 = vld [vmem:[#allocation5 + $0x72c] sm:$0xf]  ;;  %v3958_v50 = vld [vmem:[#allocation8] sm:$0xff] }
 0x103   :  { %2045 = vmatpush.bf16.msrb.mxu0 %v3125_v62  ;;  %v3831_v62 = vld [vmem:[#allocation5 + $0x40c] sm:$0xf]  ;;  %v3445_v2 = vor.u32 %v3931_v56, %v3442_v57 }
 0x105   :  { %2058 = vmatpush.bf16.msrb.mxu1 %v3253_v63  ;;  %2071 = vmatpush.bf16.msrb.mxu2 %v3381_v0  ;;  %v3042_v63 = vld [vmem:[#allocation5 + $0x418] sm:$0xf0]  ;;  %v3863_v0 = vld [vmem:[#allocation5 + $0x50c] sm:$0xf] }
 0x106   :  { %2084 = vmatpush.bf16.msrb.mxu3 %v3509_v3  ;;  %v3895_v3 = vld [vmem:[#allocation5 + $0x60c] sm:$0xf] }
 0x107   :  { %2046 = vmatpush.bf16.msrb.mxu0 %v3109_v20  ;;  %v1820_v1 = vpop.f32.mrf.mxu2  ;;  %v3045_v20 = vor.u32 %v3831_v62, %v3042_v63 }
 0x109   :  { %2059 = vmatpush.bf16.msrb.mxu1 %v3237_v22  ;;  %2072 = vmatpush.bf16.msrb.mxu2 %v3365_v9  ;;  %v3173_v22 = vor.u32 %v3863_v0, %v3170_v18  ;;  %v3301_v9 = vor.u32 %v3895_v3, %v3298_v4  ;;  %v3974_v0 = vld [vmem:[#allocation8 + $0x80] sm:$0xff] }
 0x10a   :  { %2085 = vmatpush.bf16.msrb.mxu3 %v3493_v14  ;;  %v1833_v5 = vpop.f32.mrf.mxu3  ;;  %v1806_v14 = vadd.f32 %v4281_v13, %v1793_v19  ;;  %v3963_v13 = vld [vmem:[#allocation8 + $0x28] sm:$0xff] }
 0x10b   :  { %2047 = vmatpush.bf16.msrb.mxu0 %v3093_v25  ;;  %v3962_v25 = vld [vmem:[#allocation8 + $0x20] sm:$0xff] }
 0x10c   :  { %v1819_v17 = vadd.f32 %v4283_v32, %v1806_v14 }
 0x10d   :  { %2060 = vmatpush.bf16.msrb.mxu1 %v3221_v27  ;;  %2073 = vmatpush.bf16.msrb.mxu2 %v3349_v28 }
 0x10e   :  { %2086 = vmatpush.bf16.msrb.mxu3 %v3477_v33  ;;  %v1832_v21 = vadd.f32 %v4285_v37, %v1819_v17  ;;  %v3979_v33 = vld [vmem:[#allocation8 + $0xa8] sm:$0xff]  ;;  %v3978_v37 = vld [vmem:[#allocation8 + $0xa0] sm:$0xff] }
 0x10f   :  { %2048 = vmatpush.bf16.msrb.mxu0 %v3077_v24 }
 0x111   :  { %2061 = vmatpush.bf16.msrb.mxu1 %v3205_v45  ;;  %2074 = vmatpush.bf16.msrb.mxu2 %v3333_v46  ;;  %v3977_v45 = vld [vmem:[#allocation8 + $0x98] sm:$0xff]  ;;  %v3967_v46 = vld [vmem:[#allocation8 + $0x48] sm:$0xff] }
 0x112   :  { %2087 = vmatpush.bf16.msrb.mxu3 %v3461_v51  ;;  %v2095_v51 = vmax.f32 %v4273_v52, 0.0  ;;  %v365_v52 = vperm.slane %v4263_v26, 2 }
 0x113   :  { %2049 = vmatpush.bf16.msrb.mxu0 %v3061_v59 }
 0x114   :  { %v2099_v55 = vpack.c.bf16 %v2095_v51, %v2095_v51 }
 0x115   :  { %2062 = vmatpush.bf16.msrb.mxu1 %v3189_v60  ;;  %2075 = vmatpush.bf16.msrb.mxu2 %v3317_v61  ;;  %v3975_v61 = vld [vmem:[#allocation8 + $0x88] sm:$0xff] }
 0x116   :  { %2088 = vmatpush.bf16.msrb.mxu3 %v3445_v2 }
 0x117   :  { %2050 = vmatpush.bf16.msrb.mxu0 %v3045_v20  ;;  %v1844_v27 = vpop.f32.mrf.mxu0 }
 0x118   :  { %v1845_v28 = vadd.f32 %v1844_v27, %v1832_v21  ;;  %v3985_v27 = vld [vmem:[#allocation8 + $0xd8] sm:$0xff] }
 0x119   :  { %2063 = vmatpush.bf16.msrb.mxu1 %v3173_v22  ;;  %2076 = vmatpush.bf16.msrb.mxu2 %v3301_v9  ;;  %v1857_v29 = vpop.f32.mrf.mxu1 }
 0x11a   :  { %2089 = vmatpush.bf16.msrb.mxu3 %v3429_v10  ;;  %2051 = vmatmul.bf16.vlgmr.msrb.gmra.mxu0 %v4241_v41  ;;  %v3970_v41 = vld [vmem:[#allocation8 + $0x60] sm:$0xff] }
 0x11b   :  { %2363 = vmatpush.bf16.msra.mxu0 %v3965_v11  ;;  %v3989_v11 = vld [vmem:[#allocation8 + $0xf8] sm:$0xff] }
 0x11c   :  { %2064 = vmatmul.bf16.vlgmr.msrb.gmra.mxu1 %v4245_v44  ;;  %2077 = vmatmul.bf16.vlgmr.msrb.gmra.mxu2 %v4239_v38  ;;  %v3961_v38 = vld [vmem:[#allocation8 + $0x18] sm:$0xff]  ;;  %v1858_v44 = vadd.f32 %v1857_v29, %v1845_v28 }
 0x11d   :  { %2376 = vmatpush.bf16.msra.mxu1 %v3973_v12  ;;  %2090 = vmatmul.bf16.vlgmr.msrb.gmra.mxu3 %v4243_v42  ;;  %v3969_v42 = vld [vmem:[#allocation8 + $0x58] sm:$0xff] }
 0x11e   :  { %2389 = vmatpush.bf16.msra.mxu2 %v3981_v16  ;;  %2402 = vmatpush.bf16.msra.mxu3 %v3989_v11 }
 0x11f   :  { %2364 = vmatpush.bf16.msra.mxu0 %v3964_v15  ;;  %v1870_v31 = vpop.f32.mrf.mxu2  ;;  %v1846_v36 = vpop.f32.mrf.mxu0  ;;  %v3988_v15 = vld [vmem:[#allocation8 + $0xf0] sm:$0xff] }
 0x120   :  { %v1871_v35 = vadd.f32 %v1870_v31, %v1858_v44  ;;  %v3982_v31 = vld [vmem:[#allocation8 + $0xc0] sm:$0xff] }
 0x121   :  { %2377 = vmatpush.bf16.msra.mxu1 %v3972_v8  ;;  %v1859_v40 = vpop.f32.mrf.mxu1 }
 0x122   :  { %2390 = vmatpush.bf16.msra.mxu2 %v3980_v30  ;;  %v1883_v32 = vpop.f32.mrf.mxu3  ;;  %2403 = vmatpush.bf16.msra.mxu3 %v3988_v15  ;;  %v3983_v30 = vld [vmem:[#allocation8 + $0xc8] sm:$0xff] }
 0x123   :  { %2365 = vmatpush.bf16.msra.mxu0 %v3963_v13  ;;  %v1884_v24 = vadd.f32 %v1883_v32, %v1871_v35  ;;  %v3987_v13 = vld [vmem:[#allocation8 + $0xe8] sm:$0xff] }
 0x125   :  { %2378 = vmatpush.bf16.msra.mxu1 %v3971_v23  ;;  %v2096_v49 = vmax.f32 %v1884_v24, 0.0 }
 0x126   :  { %2391 = vmatpush.bf16.msra.mxu2 %v3979_v33  ;;  %2404 = vmatpush.bf16.msra.mxu3 %v3987_v13  ;;  %v366_v33 = vperm.slane %v4263_v26, 3 }
 0x127   :  { %2366 = vmatpush.bf16.msra.mxu0 %v3962_v25  ;;  %v1872_v47 = vpop.f32.mrf.mxu2  ;;  %v2100_v54 = vpack.c.bf16 %v2096_v49, %v2096_v49  ;;  %v3986_v25 = vld [vmem:[#allocation8 + $0xe0] sm:$0xff] }
 0x129   :  { %2379 = vmatpush.bf16.msra.mxu1 %v3970_v41  ;;  %v3984_v41 = vld [vmem:[#allocation8 + $0xd0] sm:$0xff] }
 0x12a   :  { %2392 = vmatpush.bf16.msra.mxu2 %v3978_v37  ;;  %v1885_v48 = vpop.f32.mrf.mxu3  ;;  %2405 = vmatpush.bf16.msra.mxu3 %v3986_v25 }
 0x12b   :  { %2367 = vmatpush.bf16.msra.mxu0 %v3961_v38 }
 0x12d   :  { %2380 = vmatpush.bf16.msra.mxu1 %v3969_v42 }
 0x12e   :  { %2393 = vmatpush.bf16.msra.mxu2 %v3977_v45  ;;  %2406 = vmatpush.bf16.msra.mxu3 %v3985_v27 }
 0x12f   :  { %2368 = vmatpush.bf16.msra.mxu0 %v3960_v34 }
 0x131   :  { %2381 = vmatpush.bf16.msra.mxu1 %v3968_v39 }
 0x132   :  { %2394 = vmatpush.bf16.msra.mxu2 %v3976_v58  ;;  %2407 = vmatpush.bf16.msra.mxu3 %v3984_v41 }
 0x133   :  { %2369 = vmatpush.bf16.msra.mxu0 %v3959_v43 }
 0x135   :  { %2382 = vmatpush.bf16.msra.mxu1 %v3967_v46 }
 0x136   :  { %2395 = vmatpush.bf16.msra.mxu2 %v3975_v61  ;;  %2408 = vmatpush.bf16.msra.mxu3 %v3983_v30 }
 0x137   :  { %2370 = vmatpush.bf16.msra.mxu0 %v3958_v50  ;;  %v1896_v56 = vpop.f32.mrf.mxu0 }
 0x138   :  { %v1897_v18 = vadd.f32 %v1896_v56, %v365_v52  ;;  %v3996_v52 = vld [vmem:[#allocation10 + $0x30] sm:$0xff] }
 0x139   :  { %2383 = vmatpush.bf16.msra.mxu1 %v3966_v53  ;;  %v1909_v57 = vpop.f32.mrf.mxu1 }
 0x13a   :  { %2371 = vmatmul.bf16.vlgmr.msra.gmra.mxu0 %v2099_v55  ;;  %2396 = vmatpush.bf16.msra.mxu2 %v3974_v0  ;;  %v1910_v3 = vadd.f32 %v1909_v57, %v1897_v18  ;;  %v4008_v57 = vld [vmem:[%s4312_s4] ss:$0 sm:$0xff] }
 0x13b   :  { %2409 = vmatpush.bf16.msra.mxu3 %v3982_v31  ;;  %v3997_v0 = vld [vmem:[#allocation10 + $0x38] sm:$0xff] }
 0x13c   :  { %2384 = vmatmul.bf16.vlgmr.msra.gmra.mxu1 %v2100_v54  ;;  %2485 = vmatpush.bf16.msrb.mxu0 %v3997_v0  ;;  %v3993_v18 = vld [vmem:[#allocation10 + $0x18] sm:$0xff] }
 0x13f   :  { %v1922_v59 = vpop.f32.mrf.mxu2  ;;  %v1898_v62 = vpop.f32.mrf.mxu0 }
 0x140   :  { %v1923_v4 = vadd.f32 %v1922_v59, %v1910_v3  ;;  %2486 = vmatpush.bf16.msrb.mxu0 %v3996_v52  ;;  %v3992_v3 = vld [vmem:[#allocation10 + $0x10] sm:$0xff] }
 0x141   :  { %v1911_v63 = vpop.f32.mrf.mxu1 }
 0x142   :  { %v1935_v60 = vpop.f32.mrf.mxu3 }
 0x143   :  { %v1936_v5 = vadd.f32 %v1935_v60, %v1923_v4 }
 0x147   :  { %v1924_v1 = vpop.f32.mrf.mxu2 }
 0x148   :  { %v3995_v1 = vld [vmem:[#allocation10 + $0x28] sm:$0xff] }
 0x149   :  { %2487 = vmatpush.bf16.msrb.mxu0 %v3995_v1 }
 0x14a   :  { %v1937_v2 = vpop.f32.mrf.mxu3 }
 0x14b   :  { %v3994_v2 = vld [vmem:[#allocation10 + $0x20] sm:$0xff] }
 0x14d   :  { %2488 = vmatpush.bf16.msrb.mxu0 %v3994_v2 }
 0x151   :  { %2489 = vmatpush.bf16.msrb.mxu0 %v3993_v18 }
 0x155   :  { %2490 = vmatpush.bf16.msrb.mxu0 %v3992_v3 }
 0x157   :  { %v1948_v6 = vpop.f32.mrf.mxu0 }
 0x158   :  { %v1949_v7 = vadd.f32 %v1948_v6, %v1936_v5  ;;  %v3991_v6 = vld [vmem:[#allocation10 + $0x8] sm:$0xff] }
 0x159   :  { %v1961_v19 = vpop.f32.mrf.mxu1  ;;  %2491 = vmatpush.bf16.msrb.mxu0 %v3991_v6 }
 0x15a   :  { %v1962_v20 = vadd.f32 %v1961_v19, %v1949_v7  ;;  %v3990_v7 = vld [vmem:[#allocation10] sm:$0xff] }
 0x15d   :  { %2492 = vmatpush.bf16.msrb.mxu0 %v3990_v7 }
 0x15f   :  { %v1974_v22 = vpop.f32.mrf.mxu2  ;;  %v1950_v14 = vpop.f32.mrf.mxu0 }
 0x160   :  { %v1975_v9 = vadd.f32 %v1974_v22, %v1962_v20 }
 0x161   :  { %v1963_v16 = vpop.f32.mrf.mxu1 }
 0x162   :  { %v1987_v10 = vpop.f32.mrf.mxu3 }
 0x163   :  { %v1988_v12 = vadd.f32 %v1987_v10, %v1975_v9 }
 0x165   :  { %v2097_v8 = vmax.f32 %v1988_v12, 0.0  ;;  %v4009_v12 = vld [vmem:[%s4314_s6] ss:$0 sm:$0xff] }
 0x167   :  { %v2101_v17 = vpack.c.bf16 %v2097_v8, %v2097_v8  ;;  %v1976_v21 = vpop.f32.mrf.mxu2 }
 0x169   :  { %2397 = vmatmul.bf16.vlgmr.msra.gmra.mxu2 %v2101_v17 }
 0x16a   :  { %v1989_v23 = vpop.f32.mrf.mxu3 }
 0x177   :  { %v2000_v28 = vpop.f32.mrf.mxu0 }
 0x178   :  { %v2001_v36 = vadd.f32 %v2000_v28, %v366_v33 }
 0x179   :  { %v2013_v29 = vpop.f32.mrf.mxu1 }
 0x17a   :  { %v2014_v37 = vadd.f32 %v2013_v29, %v2001_v36 }
 0x17f   :  { %v2026_v38 = vpop.f32.mrf.mxu2  ;;  %v2002_v42 = vpop.f32.mrf.mxu0 }
 0x180   :  { %v2027_v39 = vadd.f32 %v2026_v38, %v2014_v37 }
 0x181   :  { %v2015_v32 = vpop.f32.mrf.mxu1 }
 0x182   :  { %v2039_v44 = vpop.f32.mrf.mxu3 }
 0x183   :  { %v2040_v40 = vadd.f32 %v2039_v44, %v2027_v39 }
 0x187   :  { %v2028_v34 = vpop.f32.mrf.mxu2 }
 0x18a   :  { %v2041_v35 = vpop.f32.mrf.mxu3 }
 0x197   :  { %v2052_v24 = vpop.f32.mrf.mxu0 }
 0x198   :  { %v2053_v45 = vadd.f32 %v2052_v24, %v2040_v40 }
 0x199   :  { %v2065_v43 = vpop.f32.mrf.mxu1 }
 0x19a   :  { %v2066_v46 = vadd.f32 %v2065_v43, %v2053_v45 }
 0x19f   :  { %v2078_v47 = vpop.f32.mrf.mxu2  ;;  %v2054_v50 = vpop.f32.mrf.mxu0 }
 0x1a0   :  { %v2079_v48 = vadd.f32 %v2078_v47, %v2066_v46  ;;  %v2091_v49 = vpop.f32.mrf.mxu3 }
 0x1a1   :  { %v2067_v51 = vpop.f32.mrf.mxu1 }
 0x1a2   :  { %v2092_v53 = vadd.f32 %v2091_v49, %v2079_v48 }
 0x1a4   :  { %v2098_v54 = vmax.f32 %v2092_v53, 0.0 }
 0x1a6   :  { %v2102_v55 = vpack.c.bf16 %v2098_v54, %v2098_v54 }
 0x1a7   :  { %v2080_v56 = vpop.f32.mrf.mxu2 }
 0x1a8   :  { %v2093_v26 = vpop.f32.mrf.mxu3  ;;  %2410 = vmatmul.bf16.vlgmr.msra.gmra.mxu3 %v2102_v55 }
 0x1b7   :  { %v2372_v58 = vpop.f32.mrf.mxu0 }
 0x1b8   :  { %v2373_v59 = vadd.f32 %v4008_v57, %v2372_v58 }
 0x1b9   :  { %v2385_v60 = vpop.f32.mrf.mxu1 }
 0x1ba   :  { %v2386_v61 = vadd.f32 %v2385_v60, %v2373_v59 }
 0x1bf   :  { %v2374_v62 = vpop.f32.mrf.mxu0 }
 0x1c1   :  { %v2387_v63 = vpop.f32.mrf.mxu1 }
 0x1ec   :  { %v2398_v4 = vpop.f32.mrf.mxu2 }
 0x1ed   :  { %v2399_v19 = vadd.f32 %v2398_v4, %v2386_v61 }
 0x1f4   :  { %v2400_v5 = vpop.f32.mrf.mxu2 }
 0x22b   :  { %v2411_v20 = vpop.f32.mrf.mxu3 }
 0x22c   :  { %v2412_v22 = vadd.f32 %v2411_v20, %v2399_v19 }
 0x22e   :  { %v2415_v9 = vmax.f32 %v2412_v22, 0.0 }
 0x230   :  { %v2416_v10 = vpack.c.bf16 %v2415_v9, %v2415_v9 }
 0x232   :  { %2493 = vmatmul.bf16.vlgmr.msrb.gmra.mxu0 %v2416_v10 }
 0x233   :  { %v2413_v11 = vpop.f32.mrf.mxu3 }
 0x2af   :  { %v2494_v14 = vpop.f32.mrf.mxu0 }
 0x2b0   :  { %v2495_v15 = vadd.f32 %v4009_v12, %v2494_v14 }
 0x2b2   :  { %2498 = vst [vmem:[#allocation11] sm:$0xff] %v2495_v15 }
 0x2b3   :  { %2509 = dma.vmem_to_hbm [thread:$0]  %s2505_s29, 128, %s2507_s9, [#allocation4]  }
 0x2b7   :  { %v2496_v16 = vpop.f32.mrf.mxu0 }
 0x2b8   :  { %4160 = dma.done.wait [#allocation4], 128  }
 0x2b9   :  { %4161 = vsyncadd [#allocation4], 4294967168 }
 0x2ba   :  { %2514 = vsyncpa [#allocation3], 1 }
 0x2bb   :  { %2515 = vsyncpa [#allocation6], 1 }
 0x2bc   :  { %2516 = vsyncpa [#allocation9], 1 }
 0x2bd   :  { %2517 = vsyncpa [#allocation4], 1 }

</bundles_post_ra>
